<compile_context>
chip_gen: v5e
topology: v5e:2x2
jax: 0.10.0
libtpu: 0.0.40
codegen_flags: <defaults>
</compile_context>

<pallas_src>
import jax
import jax.numpy as jnp
from jax.experimental import pallas as pl
from jax.experimental.pallas import tpu as pltpu

FEAT_DIM = 2048                  # ClassBlock(2048, ...) in ft_net_hr
LINEAR_NUM = 512                 # linear_num default
BN_EPS = 1e-5                    # PyTorch BatchNorm1d default eps
VMEM_BUDGET = 48 * 1024 * 1024   # fits v7x (64 MiB physical) and v5e/v6e (128 MiB)


def _round_up(x, m):
    return ((x + m - 1) // m) * m


# --------------------------------------------------------------------------- #
# Kernel
# --------------------------------------------------------------------------- #
def head_kernel(feat_ref, w_ref, b_ref, out_ref):
    # feat_ref: (TB, HW, C)   bf16, channels-last -> lane-dense
    # w_ref:    (C, classP)   bf16, BN + Linear1@Linear2 + 1/HW folded in
    # b_ref:    (1, classP)   f32
    # out_ref:  (TB, classP)  f32
    feat = feat_ref[...].astype(jnp.float32)

    # nn.AdaptiveAvgPool2d((1,1)) + x.view(B, C): spatial (sublane-axis) sum;
    # the 1/HW mean scale is pre-folded into w_ref. f32 accumulation.
    pooled = jnp.sum(feat, axis=-2)                                   # (TB, C)

    # Folded Linear(2048->512) -> BatchNorm1d(eval) -> Dropout(eval, identity)
    # -> Linear(512->class_num): one MXU pass, f32 accumulation, f32 bias epilogue.
    logits = jnp.dot(pooled.astype(w_ref.dtype), w_ref[...],
                     preferred_element_type=jnp.float32)              # (TB, classP)
    out_ref[...] = logits + b_ref[...]


# --------------------------------------------------------------------------- #
# Parameter folding (wrapper-side, done once)
# --------------------------------------------------------------------------- #
def fold_params(params, hw, weight_dtype=jnp.bfloat16):
    """Fold eval-mode BN into Linear1, fold Linear1 @ Linear2, fold 1/HW pooling.

    Exact in f32 for eval mode; the Linear-chain fold is valid because
    ft_net_hr (circle=False -> return_f=False) returns only the logits.
    """
    scale = params["gamma"] * jax.lax.rsqrt(params["var"] + BN_EPS)    # (1, L)
    w1f = params["w1"] * scale                                         # (C, L)
    b1f = (params["b1"] - params["mean"]) * scale + params["beta"]     # (1, L)

    W = (w1f @ params["w2"]) * (1.0 / hw)   # pooling mean folded into the weight
    b = b1f @ params["w2"] + params["b2"]   # bias applied after pooling -> unscaled

    class_num = W.shape[1]
    class_pad = max(128, _round_up(class_num, 128))   # lane-dense output stores
    if class_pad != class_num:
        W = jnp.pad(W, ((0, 0), (0, class_pad - class_num)))
        b = jnp.pad(b, ((0, 0), (0, class_pad - class_num)))
    return W.astype(weight_dtype), b.astype(jnp.float32), class_num


# --------------------------------------------------------------------------- #
# Wrapper
# --------------------------------------------------------------------------- #
def ft_net_hr_head(feat, params, *, channels_last=False, batch_tile=64,
                   feat_dtype=jnp.bfloat16, weight_dtype=jnp.bfloat16):
    """Fused AdaptiveAvgPool2d((1,1)) + ClassBlock head of ft_net_hr (eval mode).

    feat: (B, 2048, H, W) if channels_last=False (PyTorch NCHW forward_features
          output), or (B, H, W, 2048) if channels_last=True (free when the TPU
          backbone already runs NHWC).
    """
    if channels_last:
        B, H, W, C = feat.shape
    else:
        B, C, H, W = feat.shape
    assert C == FEAT_DIM
    HW = H * W

    # Channels-last (B, HW, C): 2048 channels on the lane axis.
    if channels_last:
        feat = feat.reshape(B, HW, C)
    else:
        feat = jnp.transpose(feat.reshape(B, C, HW), (0, 2, 1))
    feat = feat.astype(feat_dtype)   # bf16 features; kernel accumulates in f32
    feat_bytes = feat.dtype.itemsize

    Wf, bf, class_num = fold_params(params, HW, weight_dtype)
    class_pad = Wf.shape[1]

    # --- batch tiling against the VMEM budget -------------------------------
    fixed_vmem = (2 * FEAT_DIM * class_pad * Wf.dtype.itemsize   # weight (dbl buf)
                  + 2 * class_pad * 4                            # bias  (dbl buf)
                  + 2 * batch_tile * class_pad * 4               # output (dbl buf)
                  + (1 << 20))                                   # slack
    per_row = HW * FEAT_DIM * feat_bytes                         # feat bytes / batch row
    # 2 pipelined bf16 buffers + headroom for the in-kernel f32 cast temporary.
    max_tb = max(8, ((VMEM_BUDGET - fixed_vmem) // (4 * per_row)) // 8 * 8)

    TB = max(8, _round_up(min(batch_tile, max_tb), 8))
    if B > 1:
        # Guarantee >=2 grid steps so the "parallel" batch axis is sharded
        # across both v7x TensorCores (no-op on single-TC v5e/v6e).
        TB = min(TB, max(8, _round_up(-(-B // 2), 8)))
    grid_n = max(pl.cdiv(B, TB), 2 if B > 1 else 1)
    Bp = grid_n * TB
    if Bp != B:
        feat = jnp.pad(feat, ((0, Bp - B), (0, 0), (0, 0)))

    cost = pl.CostEstimate(
        flops=2 * Bp * FEAT_DIM * class_pad + Bp * HW * FEAT_DIM,
        transcendentals=0,
        bytes_accessed=(Bp * HW * FEAT_DIM * feat_bytes
                        + Wf.size * Wf.dtype.itemsize
                        + bf.size * bf.dtype.itemsize
                        + Bp * class_pad * 4),
    )

    out = pl.pallas_call(
        head_kernel,
        out_shape=jax.ShapeDtypeStruct((Bp, class_pad), jnp.float32),
        grid_spec=pltpu.PrefetchScalarGridSpec(
            num_scalar_prefetch=0,
            grid=(grid_n,),
            in_specs=[
                # lane-dense feature tile: double-buffered DMA overlaps compute
                pl.BlockSpec((TB, HW, FEAT_DIM), lambda i: (i, 0, 0)),
                # folded weight / bias: constant index_map -> fetched once, resident
                pl.BlockSpec((FEAT_DIM, class_pad), lambda i: (0, 0)),
                pl.BlockSpec((1, class_pad), lambda i: (0, 0)),
            ],
            out_specs=pl.BlockSpec((TB, class_pad), lambda i: (i, 0)),
        ),
        compiler_params=pltpu.CompilerParams(
            dimension_semantics=("parallel",),     # shard batch over v7x's 2 TCs
            vmem_limit_bytes=VMEM_BUDGET),
        cost_estimate=cost,
    )(feat, Wf, bf)
    return out[:B, :class_num]


# --------------------------------------------------------------------------- #
# Params (weights_init_kaiming / weights_init_classifier) + pure-JAX reference
# --------------------------------------------------------------------------- #
def init_params(key, class_num=64, linear_num=LINEAR_NUM):
    k1, k2, k3 = jax.random.split(key, 3)
    # Linear(2048, linear): kaiming_normal_(a=0, mode='fan_out') -> std sqrt(2/out);
    # stored pre-transposed as (in, out); bias = 0.
    w1 = (jax.random.normal(k1, (FEAT_DIM, linear_num), jnp.float32)
          * jnp.sqrt(2.0 / linear_num))
    b1 = jnp.zeros((1, linear_num), jnp.float32)
    # BatchNorm1d(linear): weight ~ N(1, 0.02), bias = 0, running stats (0, 1).
    gamma = 1.0 + 0.02 * jax.random.normal(k2, (1, linear_num), jnp.float32)
    beta = jnp.zeros((1, linear_num), jnp.float32)
    mean = jnp.zeros((1, linear_num), jnp.float32)
    var = jnp.ones((1, linear_num), jnp.float32)
    # classifier Linear(linear, class_num): weight ~ N(0, 0.001), bias = 0.
    w2 = 0.001 * jax.random.normal(k3, (linear_num, class_num), jnp.float32)
    b2 = jnp.zeros((1, class_num), jnp.float32)
    return dict(w1=w1, b1=b1, gamma=gamma, beta=beta, mean=mean, var=var,
                w2=w2, b2=b2)


def ref_head(feat_nchw, params):
    """Pure-JAX f32 eval-mode reference (unfolded) for correctness checking."""
    B, C, H, W = feat_nchw.shape
    pooled = jnp.mean(feat_nchw.reshape(B, C, H * W), axis=-1)
    h = pooled @ params["w1"] + params["b1"]
    inv = jax.lax.rsqrt(params["var"] + BN_EPS)
    h = (h - params["mean"]) * inv * params["gamma"] + params["beta"]
    # TODO(synk): train-mode BN (batch stats) and Dropout(p=0.5) masking are not
    # reproduced; eval-mode forward only (dropout = identity).
    return h @ params["w2"] + params["b2"]


if __name__ == "__main__":
    key = jax.random.PRNGKey(0)
    kf, kp = jax.random.split(key)

    # TODO(synk): the timm 'hrnet_w18' convolutional backbone
    # (model.forward_features) has no clean Pallas translation here; we feed a
    # feature map with its output shape (B, 2048, H', W') directly to the head.
    B, H, W = 2, 4, 4
    class_num = 64
    feats = jax.random.normal(kf, (B, FEAT_DIM, H, W), jnp.float32)
    params = init_params(kp, class_num=class_num)

    out = ft_net_hr_head(feats, params)          # NCHW in, channels-last kernel
    out = jax.block_until_ready(out)
    assert out.shape == (B, class_num) and out.dtype == jnp.float32

    ref = ref_head(feats, params)
    err = float(jnp.max(jnp.abs(out - ref)))
    scale = float(jnp.max(jnp.abs(ref))) + 1e-6
    # bf16 features + bf16 folded weights, f32 accumulation -> relative check.
    assert err / scale < 2e-2, (err, scale)

    print("KERNEL_OK")
</pallas_src>

<mosaic_0001>
module attributes {stable_mosaic.version = 11 : i64} {
  func.func @head_kernel(%arg0: i32, %arg1: memref<8x16x2048xbf16, #tpu.memory_space<vmem>>, %arg2: memref<2048x128xbf16, #tpu.memory_space<vmem>>, %arg3: memref<1x128xf32, #tpu.memory_space<vmem>>, %arg4: memref<8x128xf32, #tpu.memory_space<vmem>>) attributes {dimension_semantics = [#tpu.dimension_semantics<parallel>], iteration_bounds = array<i64: 2>, scalar_prefetch = 0 : i64, scratch_operands = 0 : i64, tpu.core_type = #tpu.core_type<tc>, window_params = [{transform_indices = @transform_0, window_bounds = array<i64: 8, 16, 2048>}, {pipeline_mode = #tpu.pipeline_mode<synchronous>, transform_indices = @transform_1, window_bounds = array<i64: 2048, 128>}, {pipeline_mode = #tpu.pipeline_mode<synchronous>, transform_indices = @transform_2, window_bounds = array<i64: 1, 128>}, {transform_indices = @transform_3, window_bounds = array<i64: 8, 128>}]} {
    %c0 = arith.constant 0 : index
    %c0_0 = arith.constant 0 : index
    %c0_1 = arith.constant 0 : index
    %0 = vector.load %arg1[%c0, %c0_0, %c0_1] : memref<8x16x2048xbf16, #tpu.memory_space<vmem>>, vector<8x16x2048xbf16>
    %1 = arith.extf %0 : vector<8x16x2048xbf16> to vector<8x16x2048xf32>
    %cst = arith.constant dense<0.000000e+00> : vector<8x2048xf32>
    %2 = vector.multi_reduction <add>, %1, %cst [1] : vector<8x16x2048xf32> to vector<8x2048xf32>
    %3 = arith.truncf %2 : vector<8x2048xf32> to vector<8x2048xbf16>
    %c0_2 = arith.constant 0 : index
    %c0_3 = arith.constant 0 : index
    %4 = vector.load %arg2[%c0_2, %c0_3] : memref<2048x128xbf16, #tpu.memory_space<vmem>>, vector<2048x128xbf16>
    %cst_4 = arith.constant dense<0.000000e+00> : vector<8x128xf32>
    %5 = tpu.matmul %3, %4, %cst_4 {dimension_numbers = #tpu.dot_dimension_numbers<[1], [0], [0], [1], [0, 0, 1, 1], [], []>} : vector<8x2048xbf16>, vector<2048x128xbf16>, vector<8x128xf32> -> vector<8x128xf32>
    %c0_5 = arith.constant 0 : index
    %c0_6 = arith.constant 0 : index
    %6 = vector.load %arg3[%c0_5, %c0_6] : memref<1x128xf32, #tpu.memory_space<vmem>>, vector<1x128xf32>
    %7 = vector.broadcast %6 : vector<1x128xf32> to vector<8x128xf32>
    %8 = arith.addf %5, %7 : vector<8x128xf32>
    %c0_7 = arith.constant 0 : index
    %c0_8 = arith.constant 0 : index
    %9 = vector.load %arg4[%c0_7, %c0_8] : memref<8x128xf32, #tpu.memory_space<vmem>>, vector<8x128xf32>
    tpu.vector_store %arg4[%c0_7, %c0_8], %8 {strides = array<i32>} : memref<8x128xf32, #tpu.memory_space<vmem>>, vector<8x128xf32>,
    return
  }
  func.func @transform_0(%arg0: i32) -> (i32, i32, i32) {
    %c0_i32 = arith.constant 0 : i32
    %c0_i32_0 = arith.constant 0 : i32
    %c0_i32_1 = arith.constant 0 : i32
    return %arg0, %c0_i32, %c0_i32_0 : i32, i32, i32
  }
  func.func @transform_1(%arg0: i32) -> (i32, i32) {
    %c0_i32 = arith.constant 0 : i32
    %c0_i32_0 = arith.constant 0 : i32
    %c0_i32_1 = arith.constant 0 : i32
    return %c0_i32, %c0_i32_0 : i32, i32
  }
  func.func @transform_2(%arg0: i32) -> (i32, i32) {
    %c0_i32 = arith.constant 0 : i32
    %c0_i32_0 = arith.constant 0 : i32
    %c0_i32_1 = arith.constant 0 : i32
    return %c0_i32, %c0_i32_0 : i32, i32
  }
  func.func @transform_3(%arg0: i32) -> (i32, i32) {
    %c0_i32 = arith.constant 0 : i32
    %c0_i32_0 = arith.constant 0 : i32
    return %arg0, %c0_i32 : i32, i32
  }
}

</mosaic_0001>

<bundles_post_ra>
// kernel: tpu_custom_call.1
= control target key start
LH: loop header
LB: loop body
LE: loop exit
PB: predicated region body
PF: predicated region fallthrough
CT: control target
= control target key end

     0   :  { %8 = vsyncpa [#allocation3], 0  ;;  %s5154_s0 = inlined_call_operand.hbm [shape: bf16[16,16,2048], index: 0, kind: input, shape index: {}]   ;;  %s5155_s1 = inlined_call_operand.hbm [shape: bf16[2048,128], index: 1, kind: input, shape index: {}]   ;;  %s5156_s2 = inlined_call_operand.vmem [shape: f32[1,128], index: 2, kind: input, shape index: {}]   ;;  %s5157_s3 = inlined_call_operand.hbm [shape: f32[16,128], index: 3, kind: output, shape index: {}]  }
   0x1   :  { %10 = vsyncpa [#allocation3 + $0x1], 0 }
   0x2   :  { %11 = vsyncpa [#allocation6], 0 }
   0x3   :  { %12 = vsyncpa [#allocation4], 0 }
   0x4   :  { %14 = vsyncpa [#allocation4 + $0x1], 0  ;;  %s4233_s12 = smov 0   ;;  %s4235_s13 = smov 0  }
   0x5   :  { %s4237_s14 = smov 0   ;;  %s4239_s15 = smov 0  }
   0x6 LB: > { %s4254_s16 = sadd.s32 4294967295, %s4207_s15   ;;  %s3358_s17 = sadd.s32 4294967294, %s4207_s15   ;;  %s4207_s15 = sphi %s4239_s15, %s5209_s15   ;;  %s4203_s14 = sphi %s4237_s14, %s5208_s14   ;;  %s4199_s13 = sphi %s4235_s13, %s5207_s13   ;;  %s4195_s12 = sphi %s4233_s12, %s5206_s12  }
   0x7   : > { %p40_p0 = scmp.ne.s32.totalorder %s4199_s13, %s4195_s12  ;;  %p41_p1 = scmp.eq.s32.totalorder %s4254_s16, 0 }
   0x8   : > { %p106_p2 = scmp.eq.s32.totalorder %s4254_s16, 1  ;;  %p112_p3 = scmp.eq.s32.totalorder %s3358_s17, 1 }
   0x9   : > { %p4263_p4 = por %p41_p1, %p40_p0  ;;  %p3359_p5 = scmp.ge.s32.totalorder %s4207_s15, 1 }
   0xa   : > { %p4268_p6 = por %p112_p3, %p40_p0  ;;  %p119_p7 = scmp.lt.s32.totalorder %s4207_s15, 3 }
   0xb   : > { %s130_s22 = sshll.u32 %s5155_s1, 4  ;;  %s4209_s24 = smov [#allocation5]   ;;  %s131_s22 = int_to_ptr.hbm [resolvable:$true] %s130_s22 }
   0xc   : > { %p4276_p8 = pnand %p3359_p5, %p119_p7  ;;  %s132_s25 = sshll.u32 %s4209_s24, 4  ;;  %s133_s25 = int_to_ptr.vmem [resolvable:$true] %s132_s25 }
   0xd   : > { %s4286_s26 = sadd.s32 1, %s4207_s15   ;;  %s4210_s27 = smov 64  }
   0xe   : > { %p4024_p9 = pneg %p4276_p8  ;;  %s4211_s28 = smov 4  }
   0xf   : > { %s24_s29 = ssub.s32 %s4207_s15, %s4286_s26  ;;  %s27_s30 = sadd.s32 1, %s4203_s14 }
  0x10   : > { %p4025_p10 = pnand %p4024_p9, %p41_p1  ;;  %p25_p12 = scmp.eq.s32.totalorder %s24_s29, 0 }
  0x11   : > { %p34_p13 = scmp.ne.s32.totalorder %s4203_s14, %s4199_s13  ;;  %p35_p0 = scmp.eq.s32.totalorder %s4207_s15, 0 }
  0x12   : > { %4027 = dma.hbm_to_vmem [thread:$0]  (!%p4025_p10), %s131_s22, 16384, %s133_s25, [#allocation6], %s4210_s27, %s4210_s27, %s4211_s28  }
  0x13   : > { %p4037_p3 = scmp.lt.s32.totalorder %s4207_s15, 2  ;;  %p36_p5 = por %p35_p0, %p34_p13 }
  0x14   : > { %s4298_s4 = scalar_select %p25_p12, %s4203_s14, %s27_s30  }
  0x15   : > { %p4302_p7 = por %p106_p2, %p34_p13  ;;  %s149_s6 = sand.u32 1, %s4203_s14  }
  0x16   : > { %s3887_s7 = sshll.u32 %s4207_s15, 10  ;;  %s3362_s8 = sshll.u32 %s149_s6, 10 }
  0x17   : > { %s159_s11 = scalar_lea.hbm %s5154_s0, %s3887_s7  ;;  %s153_s20 = scalar_lea.vmem [#allocation2], %s3362_s8 }
  0x18   : > { %s160_s17 = sshll.u32 %s159_s11, 4  ;;  %s162_s21 = sshll.u32 %s153_s20, 4  ;;  %s161_s17 = int_to_ptr.hbm [resolvable:$true] %s160_s17  ;;  %s163_s21 = int_to_ptr.vmem [resolvable:$true] %s162_s21 }
  0x19   : > { %p4313_p9 = pnand %p4037_p3, %p36_p5  ;;  %s150_s24 = scalar_lea.sflag [#allocation3], %s149_s6 }
  0x1a   : > { %s4107_s25 = sshra.s32 %s161_s17, 4  ;;  %s4114_s7 = scalar_lea.hbm %s5154_s0, 2048  ;;  %s4108_s25 = int_to_ptr.hbm [resolvable:$true] %s4107_s25 }
  0x1b   : > { %s4109_s28 = scalar_lea.hbm %s4108_s25, 1024  ;;  %p4111_p10 = pneg %p4313_p9 }
  0x1c   : > { %p4110_p2 = scmp.ne.s32.totalorder %s4108_s25, %s4109_s28  ;;  %p4115_p0 = scmp.lt.s32.totalorder %s4108_s25, %s5154_s0 }
  0x1d   : > { %p4116_p3 = scmp.lt.s32.totalorder %s4114_s7, %s4109_s28 }
  0x1e   : > { %p4112_p12 = pnand %p4111_p10, %p4110_p2 }
  0x1f   : > { %p4117_p5 = por %p4116_p3, %p4115_p0 }
  0x20   : > { %p4113_p13 = pneg %p4112_p12 }
  0x22   : > { %p4118_p11 = pnand %p4117_p5, %p4113_p13 }
  0x24   : > { %4121 = shalt.err (!%p4118_p11)
}
  0x25   : > { %s4212_s6 = smov 1024   ;;  %174 = sbr.rel (%p4276_p8) target bundleno = 597 (0x255), region = 32 }
  0x26   : > { %4031 = dma.hbm_to_vmem [thread:$0]  (!%p4313_p9), %s161_s17, 16384, %s163_s21, %s150_s24, %s4212_s6, %s4212_s6, %s4210_s27  }
  0x2a   : > { %s4331_s10 = sand.u32 1, %s4199_s13  }
  0x2b   : > { %s3367_s11 = sshll.u32 %s4331_s10, 10  ;;  %s177_s20 = scalar_lea.sflag [#allocation3], %s4331_s10 }
  0x2c   : > { %s4335_s25 = scalar_lea.vmem [#allocation2], %s3367_s11 }
  0x2d   : > { %4182 = dma.done.wait (%p4263_p4), %s177_s20, 16384  }
  0x2e   : > { %4184 = vsyncadd (%p4263_p4), %s177_s20, 4294950912 }
  0x2f   : > { %4186 = dma.done.wait (%p41_p1), [#allocation6], 16384  }
  0x30   : > { %4188 = vsyncadd (%p41_p1), [#allocation6], 4294950912  ;;  %v3895_v0 = vld [vmem:[#allocation5 + $0x38] sm:$0xff]  ;;  %v3894_v4 = vld [vmem:[#allocation5 + $0x30] sm:$0xff]  ;;  %vm2134_vm0 = vcmask 1041409   ;;  %vm2136_vm1 = vcmask 1042434  }
  0x31   : > { %v3903_v1 = vld [vmem:[#allocation5 + $0x78] sm:$0xff]  ;;  %3053 = vmatpush.bf16.msra.mxu0 %v3895_v0  ;;  %v3902_v5 = vld [vmem:[#allocation5 + $0x70] sm:$0xff]  ;;  %v3893_v8 = vld [vmem:[#allocation5 + $0x28] sm:$0xff]  ;;  %vm2138_vm2 = vcmask 1043459   ;;  %vm2140_vm3 = vcmask 1044484   ;;  %vm2142_vm4 = vcmask 1045509  }
  0x32   : > { %v3911_v2 = vld [vmem:[#allocation5 + $0xb8] sm:$0xff]  ;;  %3066 = vmatpush.bf16.msra.mxu1 %v3903_v1  ;;  %v3910_v6 = vld [vmem:[#allocation5 + $0xb0] sm:$0xff]  ;;  %v3901_v9 = vld [vmem:[#allocation5 + $0x68] sm:$0xff]  ;;  %vm2144_vm5 = vcmask 1046534   ;;  %vm2146_vm6 = vcmask 1047559   ;;  %s3369_s27 = sshll.u32 %s4331_s10, 3 }
  0x33   : > { %v3919_v3 = vld [vmem:[#allocation5 + $0xf8] sm:$0xff]  ;;  %3079 = vmatpush.bf16.msra.mxu2 %v3911_v2  ;;  %v3918_v7 = vld [vmem:[#allocation5 + $0xf0] sm:$0xff]  ;;  %v3909_v10 = vld [vmem:[#allocation5 + $0xa8] sm:$0xff]  ;;  %s3883_s17 = sshll.u32 %s4254_s16, 3  ;;  %s208_s28 = scalar_lea.vmem [#allocation7], %s3369_s27 }
  0x34   : > { %3092 = vmatpush.bf16.msra.mxu3 %v3919_v3  ;;  %v3917_v11 = vld [vmem:[#allocation5 + $0xe8] sm:$0xff]  ;;  %v3892_v12 = vld [vmem:[#allocation5 + $0x20] sm:$0xff]  ;;  %v3891_v16 = vld [vmem:[#allocation5 + $0x18] sm:$0xff]  ;;  %s3273_s24 = scalar_lea.hbm %s5157_s3, %s3883_s17  ;;  %s3275_s29 = sshll.u32 %s208_s28, 4  ;;  %s3276_s29 = int_to_ptr.vmem [resolvable:$true] %s3275_s29 }
  0x35   : > { %3054 = vmatpush.bf16.msra.mxu0 %v3894_v4  ;;  %v3900_v13 = vld [vmem:[#allocation5 + $0x60] sm:$0xff]  ;;  %v3899_v17 = vld [vmem:[#allocation5 + $0x58] sm:$0xff]  ;;  %v3890_v20 = vld [vmem:[#allocation5 + $0x10] sm:$0xff]  ;;  %s3277_s30 = sshll.u32 %s3273_s24, 4  ;;  %s3263_s7 = scalar_lea.sflag [#allocation4], %s4331_s10  ;;  %s3278_s30 = int_to_ptr.hbm [resolvable:$true] %s3277_s30 }
  0x36   : > { %3067 = vmatpush.bf16.msra.mxu1 %v3902_v5  ;;  %v3908_v14 = vld [vmem:[#allocation5 + $0xa0] sm:$0xff]  ;;  %v3907_v18 = vld [vmem:[#allocation5 + $0x98] sm:$0xff]  ;;  %v3898_v21 = vld [vmem:[#allocation5 + $0x50] sm:$0xff]  ;;  %s4151_s8 = sshra.s32 %s3278_s30, 4  ;;  %s4157_s11 = scalar_lea.hbm %s5157_s3, 16  ;;  %s4152_s8 = int_to_ptr.hbm [resolvable:$true] %s4151_s8 }
  0x37   : > { %3080 = vmatpush.bf16.msra.mxu2 %v3910_v6  ;;  %v3916_v15 = vld [vmem:[#allocation5 + $0xe0] sm:$0xff]  ;;  %v3915_v19 = vld [vmem:[#allocation5 + $0xd8] sm:$0xff]  ;;  %v3906_v22 = vld [vmem:[#allocation5 + $0x90] sm:$0xff]  ;;  %s4153_s9 = scalar_lea.hbm %s4152_s8, 8  ;;  %p4158_p11 = scmp.lt.s32.totalorder %s4152_s8, %s5157_s3 }
  0x38   : > { %3093 = vmatpush.bf16.msra.mxu3 %v3918_v7  ;;  %v3914_v23 = vld [vmem:[#allocation5 + $0xd0] sm:$0xff]  ;;  %v4346_v24 = vld [vmem:[%s4335_s25 + $0x8] sm:$0xff]  ;;  %p4154_p1 = scmp.ne.s32.totalorder %s4152_s8, %s4153_s9  ;;  %p4159_p9 = scmp.lt.s32.totalorder %s4157_s11, %s4153_s9 }
  0x39   : > { %3055 = vmatpush.bf16.msra.mxu0 %v3893_v8  ;;  %v4349_v25 = vld [vmem:[%s4335_s25 + $0x48] sm:$0xff]  ;;  %v340_v29 = vunpack.c.l.bf16 %v4346_v24 }
  0x3a   : > { %3068 = vmatpush.bf16.msra.mxu1 %v3901_v9  ;;  %v4352_v26 = vld [vmem:[%s4335_s25 + $0x88] sm:$0xff]  ;;  %v356_v30 = vunpack.c.l.bf16 %v4349_v25  ;;  %p4155_p4 = pnand %p4154_p1, %p4302_p7  ;;  %p4160_p2 = por %p4159_p9, %p4158_p11 }
  0x3b   : > { %3081 = vmatpush.bf16.msra.mxu2 %v3909_v10  ;;  %v4355_v27 = vld [vmem:[%s4335_s25 + $0xc8] sm:$0xff]  ;;  %v372_v36 = vunpack.c.l.bf16 %v4352_v26 }
  0x3c   : > { %3094 = vmatpush.bf16.msra.mxu3 %v3917_v11  ;;  %v4358_v28 = vld [vmem:[%s4335_s25 + $0x108] sm:$0xff]  ;;  %v388_v37 = vunpack.c.l.bf16 %v4355_v27  ;;  %v608_v47 = vadd.f32 %v356_v30, %v340_v29  ;;  %v3927_v29 = vld [vmem:[#allocation5 + $0x138] sm:$0xff]  ;;  %p4156_p8 = pneg %p4155_p4 }
  0x3d   : > { %3056 = vmatpush.bf16.msra.mxu0 %v3892_v12  ;;  %v4365_v33 = vld [vmem:[%s4335_s25 + $0x148] sm:$0xff]  ;;  %v404_v38 = vunpack.c.l.bf16 %v4358_v28  ;;  %v3888_v12 = vld [vmem:[#allocation5] sm:$0xff]  ;;  %v3935_v30 = vld [vmem:[#allocation5 + $0x178] sm:$0xff] }
  0x3e   : > { %3069 = vmatpush.bf16.msra.mxu1 %v3900_v13  ;;  %v4368_v34 = vld [vmem:[%s4335_s25 + $0x188] sm:$0xff]  ;;  %v420_v44 = vunpack.c.l.bf16 %v4365_v33  ;;  %v720_v54 = vadd.f32 %v388_v37, %v372_v36  ;;  %v609_v61 = vrot.slane %v608_v47, 4  ;;  %v3896_v13 = vld [vmem:[#allocation5 + $0x40] sm:$0xff]  ;;  %v3943_v36 = vld [vmem:[#allocation5 + $0x1b8] sm:$0xff]  ;;  %p4161_p10 = pnand %p4160_p2, %p4156_p8 }
  0x3f   : > { %3082 = vmatpush.bf16.msra.mxu2 %v3908_v14  ;;  %v4371_v35 = vld [vmem:[%s4335_s25 + $0x1c8] sm:$0xff]  ;;  %v436_v45 = vunpack.c.l.bf16 %v4368_v34 }
  0x40   : > { %3095 = vmatpush.bf16.msra.mxu3 %v3916_v15  ;;  %v3889_v40 = vld [vmem:[#allocation5 + $0x8] sm:$0xff]  ;;  %v452_v46 = vunpack.c.l.bf16 %v4371_v35  ;;  %v721_v2 = vrot.slane %v720_v54, 4  ;;  %v832_v3 = vadd.f32 %v420_v44, %v404_v38  ;;  %v610_v4 = vadd.f32 %v609_v61, %v608_v47 }
  0x41   : > { %3057 = vmatpush.bf16.msra.mxu0 %v3891_v16  ;;  %v4378_v41 = vld [vmem:[%s4335_s25 + $0x208] sm:$0xff] }
  0x42   : > { %3070 = vmatpush.bf16.msra.mxu1 %v3899_v17  ;;  %v4381_v42 = vld [vmem:[%s4335_s25 + $0x248] sm:$0xff]  ;;  %v468_v51 = vunpack.c.l.bf16 %v4378_v41  ;;  %v944_v5 = vadd.f32 %v452_v46, %v436_v45  ;;  %v722_v8 = vadd.f32 %v721_v2, %v720_v54  ;;  %v833_v9 = vrot.slane %v832_v3, 4  ;;  %v3951_v45 = vld [vmem:[#allocation5 + $0x1f8] sm:$0xff] }
  0x43   : > { %3083 = vmatpush.bf16.msra.mxu2 %v3907_v18  ;;  %v4384_v43 = vld [vmem:[%s4335_s25 + $0x288] sm:$0xff]  ;;  %v484_v52 = vunpack.c.l.bf16 %v4381_v42  ;;  %v611_v14 = vrot.slane %v610_v4, 2  ;;  %v3904_v18 = vld [vmem:[#allocation5 + $0x80] sm:$0xff] }
  0x44   : > { %3096 = vmatpush.bf16.msra.mxu3 %v3915_v19  ;;  %v4390_v48 = vld [vmem:[%s4335_s25 + $0x2c8] sm:$0xff]  ;;  %v500_v53 = vunpack.c.l.bf16 %v4384_v43  ;;  %v945_v15 = vrot.slane %v944_v5, 4  ;;  %v3912_v19 = vld [vmem:[#allocation5 + $0xc0] sm:$0xff] }
  0x45   : > { %v4393_v49 = vld [vmem:[%s4335_s25 + $0x308] sm:$0xff]  ;;  %3058 = vmatpush.bf16.msra.mxu0 %v3890_v20  ;;  %v516_v58 = vunpack.c.l.bf16 %v4390_v48  ;;  %v1056_v6 = vadd.f32 %v484_v52, %v468_v51  ;;  %v723_v20 = vrot.slane %v722_v8, 2  ;;  %v612_v37 = vadd.f32 %v611_v14, %v610_v4 }
  0x46   : > { %v4396_v50 = vld [vmem:[%s4335_s25 + $0x348] sm:$0xff]  ;;  %3071 = vmatpush.bf16.msra.mxu1 %v3898_v21  ;;  %v532_v59 = vunpack.c.l.bf16 %v4393_v49  ;;  %v834_v21 = vadd.f32 %v833_v9, %v832_v3  ;;  %v946_v38 = vadd.f32 %v945_v15, %v944_v5 }
  0x47   : > { %v3897_v55 = vld [vmem:[#allocation5 + $0x48] sm:$0xff]  ;;  %v548_v60 = vunpack.c.l.bf16 %v4396_v50  ;;  %3084 = vmatpush.bf16.msra.mxu2 %v3906_v22  ;;  %v1168_v7 = vadd.f32 %v516_v58, %v500_v53  ;;  %v1057_v16 = vrot.slane %v1056_v6, 4  ;;  %v724_v46 = vadd.f32 %v723_v20, %v722_v8  ;;  %v4413_v53 = vld [vmem:[%s4335_s25] sm:$0xff] }
  0x48   : > { %v4402_v56 = vld [vmem:[%s4335_s25 + $0x388] sm:$0xff]  ;;  %3097 = vmatpush.bf16.msra.mxu3 %v3914_v23  ;;  %v835_v47 = vrot.slane %v834_v21, 2  ;;  %v613_v54 = vrot.slane %v612_v37, 1  ;;  %v338_v5 = vunpack.c.l.bf16 %v4413_v53  ;;  %v4417_v20 = vld [vmem:[%s4335_s25 + $0x40] sm:$0xff] }
  0x49   : > { %v4405_v57 = vld [vmem:[%s4335_s25 + $0x3c8] sm:$0xff]  ;;  %v564_v0 = vunpack.c.l.bf16 %v4402_v56  ;;  %v1280_v10 = vadd.f32 %v548_v60, %v532_v59  ;;  %3059 = vmatpush.bf16.msra.mxu0 %v3889_v40  ;;  %v1169_v17 = vrot.slane %v1168_v7, 4  ;;  %v1058_v40 = vadd.f32 %v1057_v16, %v1056_v6  ;;  %v3942_v6 = vld [vmem:[#allocation5 + $0x1b0] sm:$0xff] }
  0x4a   : > { %v3905_v62 = vld [vmem:[#allocation5 + $0x88] sm:$0xff]  ;;  %v580_v1 = vunpack.c.l.bf16 %v4405_v57  ;;  %3072 = vmatpush.bf16.msra.mxu1 %v3897_v55  ;;  %v947_v55 = vrot.slane %v946_v38, 2  ;;  %v725_v60 = vrot.slane %v724_v46, 1  ;;  %v836_v61 = vadd.f32 %v835_v47, %v834_v21  ;;  %v4420_v47 = vld [vmem:[%s4335_s25 + $0x80] sm:$0xff] }
  0x4b   : > { %v3913_v63 = vld [vmem:[#allocation5 + $0xc8] sm:$0xff]  ;;  %3085 = vmatpush.bf16.msra.mxu2 %v3905_v62  ;;  %v1281_v22 = vrot.slane %v1280_v10, 4  ;;  %v1170_v44 = vadd.f32 %v1169_v17, %v1168_v7  ;;  %v1059_v58 = vrot.slane %v1058_v40, 2  ;;  %v614_v2 = vadd.f32 %v613_v54, %v612_v37  ;;  %v3950_v7 = vld [vmem:[#allocation5 + $0x1f0] sm:$0xff] }
  0x4c   : > { %v1392_v11 = vadd.f32 %v580_v1, %v564_v0  ;;  %3098 = vmatpush.bf16.msra.mxu3 %v3913_v63  ;;  %v3926_v0 = vld [vmem:[#allocation5 + $0x130] sm:$0xff]  ;;  %v948_v3 = vadd.f32 %v947_v55, %v946_v38  ;;  %v726_v8 = vadd.f32 %v725_v60, %v724_v46  ;;  %v837_v9 = vrot.slane %v836_v61, 1  ;;  %v3925_v21 = vld [vmem:[#allocation5 + $0x128] sm:$0xff] }
  0x4d   : > { %v1282_v51 = vadd.f32 %v1281_v22, %v1280_v10  ;;  %3060 = vmatpush.bf16.msra.mxu0 %v3888_v12  ;;  %v1171_v59 = vrot.slane %v1170_v44, 2  ;;  %v3934_v1 = vld [vmem:[#allocation5 + $0x170] sm:$0xff]  ;;  %v1060_v4 = vadd.f32 %v1059_v58, %v1058_v40  ;;  %v1492_v15 = vpack.c.bf16 %v614_v2, %v614_v2  ;;  %v3933_v22 = vld [vmem:[#allocation5 + $0x168] sm:$0xff] }
  0x4e   : > { %v1393_v23 = vrot.slane %v1392_v11, 4  ;;  %3073 = vmatpush.bf16.msra.mxu1 %v3896_v13  ;;  %v949_v12 = vrot.slane %v948_v3, 1  ;;  %v838_v16 = vadd.f32 %v837_v9, %v836_v61  ;;  %v3941_v37 = vld [vmem:[#allocation5 + $0x1a8] sm:$0xff]  ;;  %v354_v60 = vunpack.c.l.bf16 %v4417_v20  ;;  %v3940_v61 = vld [vmem:[#allocation5 + $0x1a0] sm:$0xff] }
  0x4f   : > { %3086 = vmatpush.bf16.msra.mxu2 %v3904_v18  ;;  %v1283_v62 = vrot.slane %v1282_v51, 2  ;;  %v1172_v10 = vadd.f32 %v1171_v59, %v1170_v44  ;;  %v1061_v13 = vrot.slane %v1060_v4, 1  ;;  %v3949_v38 = vld [vmem:[#allocation5 + $0x1e8] sm:$0xff]  ;;  %v4423_v59 = vld [vmem:[%s4335_s25 + $0xc0] sm:$0xff] }
  0x50   : > { %v1394_v52 = vadd.f32 %v1393_v23, %v1392_v11  ;;  %3099 = vmatpush.bf16.msra.mxu3 %v3912_v19  ;;  %v1508_v19 = vpack.c.bf16 %v726_v8, %v726_v8  ;;  %v950_v23 = vadd.f32 %v949_v12, %v948_v3  ;;  %v4428_v3 = vld [vmem:[%s4335_s25 + $0x100] sm:$0xff]  ;;  %v370_v12 = vunpack.c.l.bf16 %v4420_v47 }
  0x51   : > { %3105 = vmatpush.bf16.msrb.mxu0 %v3927_v29  ;;  %v1284_v11 = vadd.f32 %v1283_v62, %v1282_v51  ;;  %v1173_v17 = vrot.slane %v1172_v10, 1  ;;  %v1062_v29 = vadd.f32 %v1061_v13, %v1060_v4  ;;  %v3924_v51 = vld [vmem:[#allocation5 + $0x120] sm:$0xff] }
  0x52   : > { %v1395_v63 = vrot.slane %v1394_v52, 2  ;;  %3118 = vmatpush.bf16.msrb.mxu1 %v3935_v30  ;;  %v2024_v46 = vunpack.c.l.b16 %v1508_v19  ;;  %v1540_v55 = vpack.c.bf16 %v950_v23, %v950_v23  ;;  %v3948_v62 = vld [vmem:[#allocation5 + $0x1e0] sm:$0xff]  ;;  %v386_v19 = vunpack.c.l.bf16 %v4423_v59 }
  0x53   : > { %3131 = vmatpush.bf16.msrb.mxu2 %v3943_v36  ;;  %v1285_v18 = vrot.slane %v1284_v11, 1  ;;  %v2008_v36 = vunpack.c.l.b16 %v1492_v15  ;;  %v1174_v40 = vadd.f32 %v1173_v17, %v1172_v10  ;;  %v1556_v58 = vpack.c.bf16 %v1062_v29, %v1062_v29  ;;  %v4431_v4 = vld [vmem:[%s4335_s25 + $0x140] sm:$0xff] }
  0x54   : > { %3144 = vmatpush.bf16.msrb.mxu3 %v3951_v45  ;;  %v1396_v14 = vadd.f32 %v1395_v63, %v1394_v52  ;;  %v1524_v45 = vpack.c.bf16 %v838_v16, %v838_v16  ;;  %v3932_v52 = vld [vmem:[#allocation5 + $0x160] sm:$0xff] }
  0x55   : > { %3106 = vmatpush.bf16.msrb.mxu0 %v3926_v0  ;;  %v1286_v44 = vadd.f32 %v1285_v18, %v1284_v11  ;;  %v1572_v63 = vpack.c.bf16 %v1174_v40, %v1174_v40  ;;  %v2155_v2 = vsel %vm2134_vm0, %v2024_v46, %v2008_v36  ;;  %v2072_v8 = vunpack.c.l.b16 %v1556_v58  ;;  %v4434_v9 = vld [vmem:[%s4335_s25 + $0x180] sm:$0xff] }
  0x56   : > { %3119 = vmatpush.bf16.msrb.mxu1 %v3934_v1  ;;  %v1397_v30 = vrot.slane %v1396_v14, 1  ;;  %v2040_v1 = vunpack.c.l.b16 %v1524_v45  ;;  %v4437_v10 = vld [vmem:[%s4335_s25 + $0x1c0] sm:$0xff]  ;;  %v402_v36 = vunpack.c.l.bf16 %v4428_v3 }
  0x57   : > { %3132 = vmatpush.bf16.msrb.mxu2 %v3942_v6  ;;  %v1588_v0 = vpack.c.bf16 %v1286_v44, %v1286_v44  ;;  %v4440_v11 = vld [vmem:[%s4335_s25 + $0x200] sm:$0xff]  ;;  %v2088_v13 = vunpack.c.l.b16 %v1572_v63  ;;  %v434_v44 = vunpack.c.l.bf16 %v4434_v9  ;;  %v450_v45 = vunpack.c.l.bf16 %v4437_v10 }
  0x58   : > { %3145 = vmatpush.bf16.msrb.mxu3 %v3950_v7  ;;  %v1398_v54 = vadd.f32 %v1397_v30, %v1396_v14  ;;  %v2056_v7 = vunpack.c.l.b16 %v1540_v55  ;;  %v2156_v15 = vsel %vm2136_vm1, %v2040_v1, %v2155_v2  ;;  %v4445_v16 = vld [vmem:[%s4335_s25 + $0x240] sm:$0xff]  ;;  %v466_v46 = vunpack.c.l.bf16 %v4440_v11  ;;  %v3931_v55 = vld [vmem:[#allocation5 + $0x158] sm:$0xff] }
  0x59   : > { %3107 = vmatpush.bf16.msrb.mxu0 %v3925_v21  ;;  %v2104_v14 = vunpack.c.l.b16 %v1588_v0  ;;  %v4448_v17 = vld [vmem:[%s4335_s25 + $0x280] sm:$0xff]  ;;  %v482_v63 = vunpack.c.l.bf16 %v4445_v16  ;;  %v3939_v2 = vld [vmem:[#allocation5 + $0x198] sm:$0xff]  ;;  %v930_v39 = vadd.f32 %v450_v45, %v434_v44 }
  0x5a   : > { %3120 = vmatpush.bf16.msrb.mxu1 %v3933_v22  ;;  %v1604_v6 = vpack.c.bf16 %v1398_v54, %v1398_v54  ;;  %v4451_v18 = vld [vmem:[%s4335_s25 + $0x2c0] sm:$0xff]  ;;  %v2157_v22 = vsel %vm2138_vm2, %v2056_v7, %v2156_v15  ;;  %v3923_v54 = vld [vmem:[#allocation5 + $0x118] sm:$0xff]  ;;  %v498_v0 = vunpack.c.l.bf16 %v4448_v17 }
  0x5b   : > { %3133 = vmatpush.bf16.msrb.mxu2 %v3941_v37  ;;  %5176 = vst [vmem:[#allocation11_spill] sm:$0xff] %v4451_v18  ;;  %v4456_v23 = vld [vmem:[%s4335_s25 + $0x300] sm:$0xff]  ;;  %v418_v37 = vunpack.c.l.bf16 %v4431_v4  ;;  %v514_v1 = vunpack.c.l.bf16 %v4451_v18  ;;  %v1042_v32 = vadd.f32 %v482_v63, %v466_v46  ;;  %v931_v18 = vrot.slane %v930_v39, 4 }
  0x5c   : > { %3146 = vmatpush.bf16.msrb.mxu3 %v3949_v38  ;;  %v2120_v21 = vunpack.c.l.b16 %v1604_v6  ;;  %5177 = vst [vmem:[#allocation12_spill] sm:$0xff] %v4456_v23  ;;  %v4459_v29 = vld [vmem:[%s4335_s25 + $0x340] sm:$0xff]  ;;  %v2158_v38 = vsel %vm2140_vm3, %v2072_v8, %v2157_v22  ;;  %v3947_v6 = vld [vmem:[#allocation5 + $0x1d8] sm:$0xff]  ;;  %v530_v8 = vunpack.c.l.bf16 %v4456_v23  ;;  %v594_v22 = vadd.f32 %v354_v60, %v338_v5 }
  0x5d   : > { %5178 = vst [vmem:[#allocation13_spill] sm:$0xff] %v4459_v29  ;;  %v4462_v30 = vld [vmem:[%s4335_s25 + $0x380] sm:$0xff]  ;;  %3108 = vmatpush.bf16.msrb.mxu0 %v3924_v51  ;;  %v2159_v58 = vsel %vm2142_vm4, %v2088_v13, %v2158_v38  ;;  %v546_v51 = vunpack.c.l.bf16 %v4459_v29  ;;  %v706_v38 = vadd.f32 %v386_v19, %v370_v12  ;;  %v1154_v23 = vadd.f32 %v514_v1, %v498_v0 }
  0x5e   : > { %5179 = vst [vmem:[#allocation14_spill] sm:$0xff] %v4462_v30  ;;  %v4468_v40 = vld [vmem:[%s4335_s25 + $0x3c0] sm:$0xff]  ;;  %3121 = vmatpush.bf16.msrb.mxu1 %v3932_v52  ;;  %v2160_v7 = vsel %vm2144_vm5, %v2104_v14, %v2159_v58  ;;  %v562_v52 = vunpack.c.l.bf16 %v4462_v30  ;;  %v3922_v14 = vld [vmem:[#allocation5 + $0x110] sm:$0xff]  ;;  %v595_v31 = vrot.slane %v594_v22, 4  ;;  %v1043_v5 = vrot.slane %v1042_v32, 4 }
  0x5f   : > { %5180 = vst [vmem:[#allocation15_spill] sm:$0xff] %v4468_v40  ;;  %3134 = vmatpush.bf16.msrb.mxu2 %v3940_v61  ;;  %v2161_v13 = vsel %vm2146_vm6, %v2120_v21, %v2160_v7  ;;  %v578_v15 = vunpack.c.l.bf16 %v4468_v40  ;;  %v3930_v58 = vld [vmem:[#allocation5 + $0x150] sm:$0xff]  ;;  %v707_v29 = vrot.slane %v706_v38, 4  ;;  %v1266_v30 = vadd.f32 %v546_v51, %v530_v8 }
  0x60   : > { %3147 = vmatpush.bf16.msrb.mxu3 %v3948_v62  ;;  %v2255_v61 = vpack.c.b16 %v2161_v13, %v2161_v13  ;;  %v818_v62 = vadd.f32 %v418_v37, %v402_v36  ;;  %v3938_v21 = vld [vmem:[#allocation5 + $0x190] sm:$0xff]  ;;  %v596_v12 = vadd.f32 %v595_v31, %v594_v22  ;;  %v1155_v36 = vrot.slane %v1154_v23, 4 }
  0x61   : > { %3109 = vmatpush.bf16.msrb.mxu0 %v3923_v54  ;;  %v3946_v7 = vld [vmem:[#allocation5 + $0x1d0] sm:$0xff]  ;;  %v1378_v60 = vadd.f32 %v578_v15, %v562_v52  ;;  %v708_v19 = vadd.f32 %v707_v29, %v706_v38  ;;  %v1267_v37 = vrot.slane %v1266_v30, 4  ;;  %v932_v45 = vadd.f32 %v931_v18, %v930_v39 }
  0x62   : > { %3122 = vmatpush.bf16.msrb.mxu1 %v3931_v55  ;;  %v819_v40 = vrot.slane %v818_v62, 4  ;;  %3087 = vmatmul.bf16.vlgmr.msra.gmra.mxu2 %v2255_v61  ;;  %v1044_v46 = vadd.f32 %v1043_v5, %v1042_v32  ;;  %v597_v55 = vrot.slane %v596_v12, 2  ;;  %v1156_v0 = vadd.f32 %v1155_v36, %v1154_v23 }
  0x63   : > { %3135 = vmatpush.bf16.msrb.mxu2 %v3939_v2  ;;  %v1379_v54 = vrot.slane %v1378_v60, 4  ;;  %v709_v63 = vrot.slane %v708_v19, 2  ;;  %v1268_v1 = vadd.f32 %v1267_v37, %v1266_v30 }
  0x64   : > { %3148 = vmatpush.bf16.msrb.mxu3 %v3947_v6  ;;  %v820_v44 = vadd.f32 %v819_v40, %v818_v62  ;;  %v933_v6 = vrot.slane %v932_v45, 2  ;;  %v1045_v8 = vrot.slane %v1044_v46, 2  ;;  %v598_v31 = vadd.f32 %v597_v55, %v596_v12 }
  0x65   : > { %3110 = vmatpush.bf16.msrb.mxu0 %v3922_v14  ;;  %v1380_v51 = vadd.f32 %v1379_v54, %v1378_v60  ;;  %v710_v29 = vadd.f32 %v709_v63, %v708_v19  ;;  %v1157_v52 = vrot.slane %v1156_v0, 2  ;;  %v1269_v13 = vrot.slane %v1268_v1, 2 }
  0x66   : > { %3123 = vmatpush.bf16.msrb.mxu1 %v3930_v58  ;;  %v821_v2 = vrot.slane %v820_v44, 2  ;;  %v934_v39 = vadd.f32 %v933_v6, %v932_v45  ;;  %v1046_v32 = vadd.f32 %v1045_v8, %v1044_v46  ;;  %v599_v15 = vrot.slane %v598_v31, 1 }
  0x67   : > { %3136 = vmatpush.bf16.msrb.mxu2 %v3938_v21  ;;  %v1381_v18 = vrot.slane %v1380_v51, 2  ;;  %v711_v22 = vrot.slane %v710_v29, 1  ;;  %v1158_v38 = vadd.f32 %v1157_v52, %v1156_v0  ;;  %v1270_v61 = vadd.f32 %v1269_v13, %v1268_v1 }
  0x68   : > { %3149 = vmatpush.bf16.msrb.mxu3 %v3946_v7  ;;  %v822_v40 = vadd.f32 %v821_v2, %v820_v44  ;;  %v935_v30 = vrot.slane %v934_v39, 1  ;;  %v1047_v62 = vrot.slane %v1046_v32, 1  ;;  %v600_v58 = vadd.f32 %v599_v15, %v598_v31 }
  0x69   : > { %v1382_v14 = vadd.f32 %v1381_v18, %v1380_v51  ;;  %v712_v21 = vadd.f32 %v711_v22, %v710_v29  ;;  %v1159_v7 = vrot.slane %v1158_v38, 1  ;;  %v1271_v5 = vrot.slane %v1270_v61, 1 }
  0x6a   : > { %v823_v23 = vrot.slane %v822_v40, 1  ;;  %v936_v12 = vadd.f32 %v935_v30, %v934_v39  ;;  %v1048_v19 = vadd.f32 %v1047_v62, %v1046_v32  ;;  %v1490_v45 = vpack.c.bf16 %v600_v58, %v600_v58 }
  0x6b   : > { %v1383_v36 = vrot.slane %v1382_v14, 1  ;;  %v1160_v37 = vadd.f32 %v1159_v7, %v1158_v38  ;;  %v1272_v44 = vadd.f32 %v1271_v5, %v1270_v61  ;;  %v1506_v46 = vpack.c.bf16 %v712_v21, %v712_v21 }
  0x6c   : > { %v824_v60 = vadd.f32 %v823_v23, %v822_v40  ;;  %v1538_v63 = vpack.c.bf16 %v936_v12, %v936_v12  ;;  %v1554_v0 = vpack.c.bf16 %v1048_v19, %v1048_v19  ;;  %v2006_v6 = vunpack.c.l.b16 %v1490_v45 }
  0x6d   : > { %v1384_v54 = vadd.f32 %v1383_v36, %v1382_v14  ;;  %v1570_v1 = vpack.c.bf16 %v1160_v37, %v1160_v37  ;;  %v1586_v2 = vpack.c.bf16 %v1272_v44, %v1272_v44  ;;  %v2022_v8 = vunpack.c.l.b16 %v1506_v46 }
  0x6e   : > { %v1522_v55 = vpack.c.bf16 %v824_v60, %v824_v60  ;;  %v2054_v29 = vunpack.c.l.b16 %v1538_v63  ;;  %v2070_v52 = vunpack.c.l.b16 %v1554_v0  ;;  %v389_v32 = vunpack.c.h.bf16 %v4355_v27 }
  0x6f   : > { %v1602_v51 = vpack.c.bf16 %v1384_v54, %v1384_v54  ;;  %v2086_v13 = vunpack.c.l.b16 %v1570_v1  ;;  %v2102_v40 = vunpack.c.l.b16 %v1586_v2  ;;  %v2135_v39 = vsel %vm2134_vm0, %v2022_v8, %v2006_v6 }
  0x70   : > { %v2038_v31 = vunpack.c.l.b16 %v1522_v55  ;;  %v405_v22 = vunpack.c.h.bf16 %v4358_v28  ;;  %v421_v38 = vunpack.c.h.bf16 %v4365_v33  ;;  %v437_v23 = vunpack.c.h.bf16 %v4368_v34 }
  0x71   : > { %v2118_v18 = vunpack.c.l.b16 %v1602_v51  ;;  %v453_v30 = vunpack.c.h.bf16 %v4371_v35  ;;  %v469_v62 = vunpack.c.h.bf16 %v4378_v41  ;;  %v485_v58 = vunpack.c.h.bf16 %v4381_v42 }
  0x72   : > { %v2137_v15 = vsel %vm2136_vm1, %v2038_v31, %v2135_v39  ;;  %v501_v27 = vunpack.c.h.bf16 %v4384_v43  ;;  %v517_v21 = vunpack.c.h.bf16 %v4390_v48  ;;  %v533_v33 = vunpack.c.h.bf16 %v4393_v49 }
  0x73   : > { %v2139_v61 = vsel %vm2138_vm2, %v2054_v29, %v2137_v15  ;;  %v549_v7 = vunpack.c.h.bf16 %v4396_v50  ;;  %v565_v34 = vunpack.c.h.bf16 %v4402_v56  ;;  %v581_v41 = vunpack.c.h.bf16 %v4405_v57 }
  0x74   : > { %v2141_v14 = vsel %vm2140_vm3, %v2070_v52, %v2139_v61  ;;  %v5181_v5 = vunpack.c.h.bf16 %v4346_v24  ;;  %v5182_v42 = vunpack.c.h.bf16 %v4349_v25  ;;  %v5183_v43 = vunpack.c.h.bf16 %v4352_v26 }
  0x75   : > { %v2143_v28 = vsel %vm2142_vm4, %v2086_v13, %v2141_v14  ;;  %v839_v19 = vadd.f32 %v421_v38, %v405_v22  ;;  %v951_v49 = vadd.f32 %v453_v30, %v437_v23  ;;  %v1063_v36 = vadd.f32 %v485_v58, %v469_v62 }
  0x76   : > { %v2145_v35 = vsel %vm2144_vm5, %v2102_v40, %v2143_v28  ;;  %v615_v60 = vadd.f32 %v5182_v42, %v5181_v5  ;;  %v727_v48 = vadd.f32 %v389_v32, %v5183_v43  ;;  %v1175_v44 = vadd.f32 %v517_v21, %v501_v27 }
  0x77   : > { %v2147_v12 = vsel %vm2146_vm6, %v2118_v18, %v2145_v35  ;;  %v840_v45 = vrot.slane %v839_v19, 4  ;;  %v952_v46 = vrot.slane %v951_v49, 4  ;;  %v1064_v57 = vrot.slane %v1063_v36, 4 }
  0x78   : > { %v2253_v50 = vpack.c.b16 %v2147_v12, %v2147_v12  ;;  %v616_v37 = vrot.slane %v615_v60, 4  ;;  %v728_v56 = vrot.slane %v727_v48, 4  ;;  %v1287_v54 = vadd.f32 %v549_v7, %v533_v33 }
  0x79   : > { %v1176_v55 = vrot.slane %v1175_v44, 4  ;;  %v1399_v63 = vadd.f32 %v581_v41, %v565_v34  ;;  %v841_v26 = vadd.f32 %v840_v45, %v839_v19  ;;  %v953_v0 = vadd.f32 %v952_v46, %v951_v49 }
  0x7a   : > { %3061 = vmatmul.bf16.vlgmr.msra.gmra.mxu0 %v2253_v50  ;;  %v617_v24 = vadd.f32 %v616_v37, %v615_v60  ;;  %v729_v25 = vadd.f32 %v728_v56, %v727_v48  ;;  %v1065_v1 = vadd.f32 %v1064_v57, %v1063_v36  ;;  %v1288_v2 = vrot.slane %v1287_v54, 4 }
  0x7b   : > { %v1177_v51 = vadd.f32 %v1176_v55, %v1175_v44  ;;  %v1400_v31 = vrot.slane %v1399_v63, 4  ;;  %v842_v29 = vrot.slane %v841_v26, 2  ;;  %v954_v52 = vrot.slane %v953_v0, 2 }
  0x7c   : > { %v618_v6 = vrot.slane %v617_v24, 2  ;;  %v730_v8 = vrot.slane %v729_v25, 2  ;;  %v1066_v13 = vrot.slane %v1065_v1, 2  ;;  %v1289_v40 = vadd.f32 %v1288_v2, %v1287_v54 }
  0x7d   : > { %v1178_v18 = vrot.slane %v1177_v51, 2  ;;  %v1401_v15 = vadd.f32 %v1400_v31, %v1399_v63  ;;  %v843_v22 = vadd.f32 %v842_v29, %v841_v26  ;;  %v955_v38 = vadd.f32 %v954_v52, %v953_v0  ;;  %v3921_v31 = vld [vmem:[#allocation5 + $0x108] sm:$0xff] }
  0x7e   : > { %v619_v39 = vadd.f32 %v618_v6, %v617_v24  ;;  %v731_v32 = vadd.f32 %v730_v8, %v729_v25  ;;  %v1067_v61 = vadd.f32 %v1066_v13, %v1065_v1  ;;  %v1290_v23 = vrot.slane %v1289_v40, 2  ;;  %v3929_v29 = vld [vmem:[#allocation5 + $0x148] sm:$0xff]  ;;  %3111 = vmatpush.bf16.msrb.mxu0 %v3921_v31 }
  0x7f   : > { %v1179_v14 = vadd.f32 %v1178_v18, %v1177_v51  ;;  %v1402_v58 = vrot.slane %v1401_v15, 2  ;;  %v844_v27 = vrot.slane %v843_v22, 1  ;;  %v956_v21 = vrot.slane %v955_v38, 1  ;;  %v3937_v52 = vld [vmem:[#allocation5 + $0x188] sm:$0xff]  ;;  %3124 = vmatpush.bf16.msrb.mxu1 %v3929_v29 }
  0x80   : > { %v620_v30 = vrot.slane %v619_v39, 1  ;;  %v732_v62 = vrot.slane %v731_v32, 1  ;;  %v1068_v28 = vrot.slane %v1067_v61, 1  ;;  %v1291_v33 = vadd.f32 %v1290_v23, %v1289_v40  ;;  %v3945_v18 = vld [vmem:[#allocation5 + $0x1c8] sm:$0xff]  ;;  %3137 = vmatpush.bf16.msrb.mxu2 %v3937_v52  ;;  %v3928_v23 = vld [vmem:[#allocation5 + $0x140] sm:$0xff] }
  0x81   : > { %v1180_v35 = vrot.slane %v1179_v14, 1  ;;  %v1403_v41 = vadd.f32 %v1402_v58, %v1401_v15  ;;  %v845_v5 = vadd.f32 %v844_v27, %v843_v22  ;;  %v957_v42 = vadd.f32 %v956_v21, %v955_v38  ;;  %3150 = vmatpush.bf16.msrb.mxu3 %v3945_v18  ;;  %v5186_v58 = vld [vmem:[#allocation13_spill] sm:$0xff]  ;;  %v3959_v21 = vld [vmem:[#allocation5 + $0x238] sm:$0xff] }
  0x82   : > { %v621_v7 = vadd.f32 %v620_v30, %v619_v39  ;;  %v733_v34 = vadd.f32 %v732_v62, %v731_v32  ;;  %v1069_v60 = vadd.f32 %v1068_v28, %v1067_v61  ;;  %v1292_v43 = vrot.slane %v1291_v33, 1  ;;  %v3936_v30 = vld [vmem:[#allocation5 + $0x180] sm:$0xff] }
  0x83   : > { %v1181_v48 = vadd.f32 %v1180_v35, %v1179_v14  ;;  %v1404_v12 = vrot.slane %v1403_v41, 1  ;;  %v1525_v50 = vpack.c.bf16 %v845_v5, %v845_v5  ;;  %v1541_v37 = vpack.c.bf16 %v957_v42, %v957_v42  ;;  %v3975_v35 = vld [vmem:[#allocation5 + $0x2b8] sm:$0xff]  ;;  %3125 = vmatpush.bf16.msrb.mxu1 %v3928_v23 }
  0x84   : > { %v1493_v19 = vpack.c.bf16 %v621_v7, %v621_v7  ;;  %v1509_v49 = vpack.c.bf16 %v733_v34, %v733_v34  ;;  %v1293_v36 = vadd.f32 %v1292_v43, %v1291_v33  ;;  %v1557_v56 = vpack.c.bf16 %v1069_v60, %v1069_v60  ;;  %v3944_v34 = vld [vmem:[#allocation5 + $0x1c0] sm:$0xff]  ;;  %v3983_v43 = vld [vmem:[#allocation5 + $0x2f8] sm:$0xff]  ;;  %3138 = vmatpush.bf16.msrb.mxu2 %v3936_v30 }
  0x85   : > { %v1405_v44 = vadd.f32 %v1404_v12, %v1403_v41  ;;  %v1573_v45 = vpack.c.bf16 %v1181_v48, %v1181_v48  ;;  %v2041_v24 = vunpack.c.l.b16 %v1525_v50  ;;  %v2057_v25 = vunpack.c.l.b16 %v1541_v37  ;;  %3151 = vmatpush.bf16.msrb.mxu3 %v3944_v34 }
  0x86   : > { %v2009_v46 = vunpack.c.l.b16 %v1493_v19  ;;  %v2025_v57 = vunpack.c.l.b16 %v1509_v49  ;;  %v1589_v54 = vpack.c.bf16 %v1293_v36, %v1293_v36  ;;  %v2073_v55 = vunpack.c.l.b16 %v1557_v56 }
  0x87   : > { %v1605_v63 = vpack.c.bf16 %v1405_v44, %v1405_v44  ;;  %v2089_v26 = vunpack.c.l.b16 %v1573_v45  ;;  %v339_v1 = vunpack.c.h.bf16 %v4413_v53  ;;  %v355_v8 = vunpack.c.h.bf16 %v4417_v20  ;;  %v3958_v44 = vld [vmem:[#allocation5 + $0x230] sm:$0xff] }
  0x88   : > { %v2162_v0 = vsel %vm2134_vm0, %v2025_v57, %v2009_v46  ;;  %v2105_v2 = vunpack.c.l.b16 %v1589_v54  ;;  %v371_v51 = vunpack.c.h.bf16 %v4420_v47  ;;  %v387_v39 = vunpack.c.h.bf16 %v4423_v59  ;;  %v3920_v47 = vld [vmem:[#allocation5 + $0x100] sm:$0xff]  ;;  %3183 = vmatpush.bf16.msra.mxu2 %v3975_v35 }
  0x89   : > { %v2163_v6 = vsel %vm2136_vm1, %v2041_v24, %v2162_v0  ;;  %v2121_v13 = vunpack.c.l.b16 %v1605_v63  ;;  %v403_v32 = vunpack.c.h.bf16 %v4428_v3  ;;  %v419_v15 = vunpack.c.h.bf16 %v4431_v4  ;;  %3112 = vmatpush.bf16.msrb.mxu0 %v3920_v47  ;;  %v3974_v24 = vld [vmem:[#allocation5 + $0x2b0] sm:$0xff] }
  0x8a   : > { %v2164_v40 = vsel %vm2138_vm2, %v2057_v25, %v2163_v6  ;;  %v435_v22 = vunpack.c.h.bf16 %v4434_v9  ;;  %v451_v20 = vunpack.c.h.bf16 %v4437_v10  ;;  %v467_v61 = vunpack.c.h.bf16 %v4440_v11  ;;  %v5184_v9 = vld [vmem:[#allocation11_spill] sm:$0xff]  ;;  %v5185_v10 = vld [vmem:[#allocation12_spill] sm:$0xff]  ;;  %v5187_v11 = vld [vmem:[#allocation14_spill] sm:$0xff] }
  0x8b   : > { %v2165_v53 = vsel %vm2140_vm3, %v2073_v55, %v2164_v40  ;;  %v483_v59 = vunpack.c.h.bf16 %v4445_v16  ;;  %v499_v3 = vunpack.c.h.bf16 %v4448_v17  ;;  %v515_v62 = vunpack.c.h.bf16 %v5184_v9  ;;  %v5188_v16 = vld [vmem:[#allocation15_spill] sm:$0xff] }
  0x8c   : > { %v2166_v38 = vsel %vm2142_vm4, %v2089_v26, %v2165_v53  ;;  %v531_v14 = vunpack.c.h.bf16 %v5185_v10  ;;  %v547_v27 = vunpack.c.h.bf16 %v5186_v58  ;;  %v563_v33 = vunpack.c.h.bf16 %v5187_v11  ;;  %v3982_v0 = vld [vmem:[#allocation5 + $0x2f0] sm:$0xff]  ;;  %3184 = vmatpush.bf16.msra.mxu2 %v3974_v24  ;;  %v4556_v24 = vld [vmem:[%s4335_s25 + $0x1d8] sm:$0xff] }
  0x8d   : > { %v2167_v4 = vsel %vm2144_vm5, %v2105_v2, %v2166_v38  ;;  %v579_v7 = vunpack.c.h.bf16 %v5188_v16  ;;  %v601_v17 = vadd.f32 %v355_v8, %v339_v1  ;;  %v713_v5 = vadd.f32 %v387_v39, %v371_v51  ;;  %3157 = vmatpush.bf16.msra.mxu0 %v3959_v21 }
  0x8e   : > { %v2168_v28 = vsel %vm2146_vm6, %v2121_v13, %v2167_v4  ;;  %v825_v42 = vadd.f32 %v419_v15, %v403_v32  ;;  %v937_v60 = vadd.f32 %v451_v20, %v435_v22  ;;  %v1049_v12 = vadd.f32 %v483_v59, %v467_v61 }
  0x8f   : > { %v2256_v41 = vpack.c.b16 %v2168_v28, %v2168_v28  ;;  %v602_v48 = vrot.slane %v601_v17, 4  ;;  %v1161_v19 = vadd.f32 %v515_v62, %v499_v3  ;;  %v1273_v49 = vadd.f32 %v547_v27, %v531_v14 }
  0x90   : > { %v714_v36 = vrot.slane %v713_v5, 4  ;;  %v826_v50 = vrot.slane %v825_v42, 4  ;;  %v938_v37 = vrot.slane %v937_v60, 4  ;;  %v1385_v56 = vadd.f32 %v579_v7, %v563_v33 }
  0x91   : > { %3100 = vmatmul.bf16.vlgmr.msra.gmra.mxu3 %v2256_v41  ;;  %v603_v45 = vadd.f32 %v602_v48, %v601_v17  ;;  %v1050_v46 = vrot.slane %v1049_v12, 4  ;;  %v1162_v57 = vrot.slane %v1161_v19, 4  ;;  %v1274_v54 = vrot.slane %v1273_v49, 4  ;;  %3158 = vmatpush.bf16.msra.mxu0 %v3958_v44  ;;  %v4535_v41 = vld [vmem:[%s4335_s25 + $0x18] sm:$0xff] }
  0x92   : > { %v715_v25 = vadd.f32 %v714_v36, %v713_v5  ;;  %v827_v55 = vadd.f32 %v826_v50, %v825_v42  ;;  %v939_v63 = vadd.f32 %v938_v37, %v937_v60  ;;  %v1386_v26 = vrot.slane %v1385_v56, 4  ;;  %3196 = vmatpush.bf16.msra.mxu3 %v3983_v43  ;;  %v4538_v48 = vld [vmem:[%s4335_s25 + $0x58] sm:$0xff] }
  0x93   : > { %v604_v1 = vrot.slane %v603_v45, 2  ;;  %v1051_v2 = vadd.f32 %v1050_v46, %v1049_v12  ;;  %v1163_v6 = vadd.f32 %v1162_v57, %v1161_v19  ;;  %v1275_v8 = vadd.f32 %v1274_v54, %v1273_v49  ;;  %v4541_v12 = vld [vmem:[%s4335_s25 + $0x98] sm:$0xff] }
  0x94   : > { %v716_v51 = vrot.slane %v715_v25, 2  ;;  %v828_v31 = vrot.slane %v827_v55, 2  ;;  %v940_v29 = vrot.slane %v939_v63, 2  ;;  %v1387_v52 = vadd.f32 %v1386_v26, %v1385_v56  ;;  %v4544_v37 = vld [vmem:[%s4335_s25 + $0xd8] sm:$0xff] }
  0x95   : > { %v605_v13 = vadd.f32 %v604_v1, %v603_v45  ;;  %v1052_v40 = vrot.slane %v1051_v2, 2  ;;  %v1164_v39 = vrot.slane %v1163_v6, 2  ;;  %v1276_v32 = vrot.slane %v1275_v8, 2  ;;  %v4547_v56 = vld [vmem:[%s4335_s25 + $0x118] sm:$0xff] }
  0x96   : > { %v717_v18 = vadd.f32 %v716_v51, %v715_v25  ;;  %v829_v53 = vadd.f32 %v828_v31, %v827_v55  ;;  %v941_v15 = vadd.f32 %v940_v29, %v939_v63  ;;  %v1388_v22 = vrot.slane %v1387_v52, 2  ;;  %3197 = vmatpush.bf16.msra.mxu3 %v3982_v0  ;;  %v4550_v44 = vld [vmem:[%s4335_s25 + $0x158] sm:$0xff] }
  0x97   : > { %v606_v20 = vrot.slane %v605_v13, 1  ;;  %v1053_v47 = vadd.f32 %v1052_v40, %v1051_v2  ;;  %v1165_v38 = vadd.f32 %v1164_v39, %v1163_v6  ;;  %v1277_v61 = vadd.f32 %v1276_v32, %v1275_v8  ;;  %v4553_v54 = vld [vmem:[%s4335_s25 + $0x198] sm:$0xff] }
  0x98   : > { %v718_v59 = vrot.slane %v717_v18, 1  ;;  %v830_v3 = vrot.slane %v829_v53, 1  ;;  %v942_v23 = vrot.slane %v941_v15, 1  ;;  %v1389_v30 = vadd.f32 %v1388_v22, %v1387_v52  ;;  %v4559_v25 = vld [vmem:[%s4335_s25 + $0x218] sm:$0xff] }
  0x99   : > { %v607_v4 = vadd.f32 %v606_v20, %v605_v13  ;;  %v1054_v9 = vrot.slane %v1053_v47, 1  ;;  %v1166_v62 = vrot.slane %v1165_v38, 1  ;;  %v1278_v10 = vrot.slane %v1277_v61, 1  ;;  %v4564_v0 = vld [vmem:[%s4335_s25 + $0x258] sm:$0xff] }
  0x9a   : > { %v719_v14 = vadd.f32 %v718_v59, %v717_v18  ;;  %v831_v58 = vadd.f32 %v830_v3, %v829_v53  ;;  %v943_v27 = vadd.f32 %v942_v23, %v941_v15  ;;  %v1390_v21 = vrot.slane %v1389_v30, 1  ;;  %v4567_v1 = vld [vmem:[%s4335_s25 + $0x298] sm:$0xff] }
  0x9b   : > { %v1055_v28 = vadd.f32 %v1054_v9, %v1053_v47  ;;  %v1167_v11 = vadd.f32 %v1166_v62, %v1165_v38  ;;  %v1279_v33 = vadd.f32 %v1278_v10, %v1277_v61  ;;  %v1491_v16 = vpack.c.bf16 %v607_v4, %v607_v4  ;;  %v4570_v2 = vld [vmem:[%s4335_s25 + $0x2d8] sm:$0xff] }
  0x9c   : > { %v1391_v7 = vadd.f32 %v1390_v21, %v1389_v30  ;;  %v1507_v17 = vpack.c.bf16 %v719_v14, %v719_v14  ;;  %v1523_v34 = vpack.c.bf16 %v831_v58, %v831_v58  ;;  %v1539_v35 = vpack.c.bf16 %v943_v27, %v943_v27  ;;  %v4576_v31 = vld [vmem:[%s4335_s25 + $0x318] sm:$0xff] }
  0x9d   : > { %v1555_v5 = vpack.c.bf16 %v1055_v28, %v1055_v28  ;;  %v1571_v42 = vpack.c.bf16 %v1167_v11, %v1167_v11  ;;  %v1587_v60 = vpack.c.bf16 %v1279_v33, %v1279_v33  ;;  %v2007_v43 = vunpack.c.l.b16 %v1491_v16  ;;  %v4579_v29 = vld [vmem:[%s4335_s25 + $0x358] sm:$0xff] }
  0x9e   : > { %v1603_v19 = vpack.c.bf16 %v1391_v7, %v1391_v7  ;;  %v2023_v49 = vunpack.c.l.b16 %v1507_v17  ;;  %v2039_v36 = vunpack.c.l.b16 %v1523_v34  ;;  %v2055_v50 = vunpack.c.l.b16 %v1539_v35  ;;  %v4582_v52 = vld [vmem:[%s4335_s25 + $0x398] sm:$0xff] }
  0x9f   : > { %v2071_v45 = vunpack.c.l.b16 %v1555_v5  ;;  %v2087_v46 = vunpack.c.l.b16 %v1571_v42  ;;  %v2103_v57 = vunpack.c.l.b16 %v1587_v60  ;;  %v344_v55 = vunpack.c.l.bf16 %v4535_v41  ;;  %v4589_v18 = vld [vmem:[%s4335_s25 + $0x3d8] sm:$0xff] }
  0xa0   : > { %v2119_v63 = vunpack.c.l.b16 %v1603_v19  ;;  %v2148_v26 = vsel %vm2134_vm0, %v2023_v49, %v2007_v43  ;;  %v360_v6 = vunpack.c.l.bf16 %v4538_v48  ;;  %v376_v8 = vunpack.c.l.bf16 %v4541_v12  ;;  %v3967_v58 = vld [vmem:[#allocation5 + $0x278] sm:$0xff]  ;;  %v3966_v49 = vld [vmem:[#allocation5 + $0x270] sm:$0xff] }
  0xa1   : > { %v2149_v51 = vsel %vm2136_vm1, %v2039_v36, %v2148_v26  ;;  %v392_v13 = vunpack.c.l.bf16 %v4544_v37  ;;  %v408_v40 = vunpack.c.l.bf16 %v4547_v56  ;;  %v424_v39 = vunpack.c.l.bf16 %v4550_v44 }
  0xa2   : > { %v2150_v32 = vsel %vm2138_vm2, %v2055_v50, %v2149_v51  ;;  %v440_v53 = vunpack.c.l.bf16 %v4553_v54  ;;  %v456_v15 = vunpack.c.l.bf16 %v4556_v24  ;;  %v472_v22 = vunpack.c.l.bf16 %v4559_v25 }
  0xa3   : > { %v2151_v20 = vsel %vm2140_vm3, %v2071_v45, %v2150_v32  ;;  %v488_v47 = vunpack.c.l.bf16 %v4564_v0  ;;  %v504_v38 = vunpack.c.l.bf16 %v4567_v1  ;;  %v520_v61 = vunpack.c.l.bf16 %v4570_v2 }
  0xa4   : > { %v2152_v59 = vsel %vm2142_vm4, %v2087_v46, %v2151_v20  ;;  %v536_v3 = vunpack.c.l.bf16 %v4576_v31  ;;  %v552_v23 = vunpack.c.l.bf16 %v4579_v29  ;;  %v568_v30 = vunpack.c.l.bf16 %v4582_v52 }
  0xa5   : > { %v2153_v4 = vsel %vm2144_vm5, %v2103_v57, %v2152_v59  ;;  %v584_v9 = vunpack.c.l.bf16 %v4589_v18  ;;  %v636_v62 = vadd.f32 %v360_v6, %v344_v55  ;;  %v748_v10 = vadd.f32 %v392_v13, %v376_v8 }
  0xa6   : > { %v2154_v14 = vsel %vm2146_vm6, %v2119_v63, %v2153_v4  ;;  %v860_v27 = vadd.f32 %v424_v39, %v408_v40  ;;  %v972_v21 = vadd.f32 %v456_v15, %v440_v53  ;;  %v1084_v28 = vadd.f32 %v488_v47, %v472_v22 }
  0xa7   : > { %v2254_v11 = vpack.c.b16 %v2154_v14, %v2154_v14  ;;  %v637_v33 = vrot.slane %v636_v62, 4  ;;  %v749_v16 = vrot.slane %v748_v10, 4  ;;  %v1196_v7 = vadd.f32 %v520_v61, %v504_v38 }
  0xa8   : > { %v861_v17 = vrot.slane %v860_v27, 4  ;;  %v973_v34 = vrot.slane %v972_v21, 4  ;;  %v1085_v35 = vrot.slane %v1084_v28, 4  ;;  %v1308_v5 = vadd.f32 %v552_v23, %v536_v3 }
  0xa9   : > { %3074 = vmatmul.bf16.vlgmr.msra.gmra.mxu1 %v2254_v11  ;;  %v638_v42 = vadd.f32 %v637_v33, %v636_v62  ;;  %v750_v60 = vadd.f32 %v749_v16, %v748_v10  ;;  %v1197_v43 = vrot.slane %v1196_v7, 4  ;;  %v1420_v19 = vadd.f32 %v584_v9, %v568_v30 }
  0xaa   : > { %3170 = vmatpush.bf16.msra.mxu1 %v3967_v58  ;;  %v862_v36 = vadd.f32 %v861_v17, %v860_v27  ;;  %v974_v50 = vadd.f32 %v973_v34, %v972_v21  ;;  %v1086_v45 = vadd.f32 %v1085_v35, %v1084_v28  ;;  %v1309_v46 = vrot.slane %v1308_v5, 4 }
  0xab   : > { %v639_v57 = vrot.slane %v638_v42, 2  ;;  %v751_v55 = vrot.slane %v750_v60, 2  ;;  %v1198_v63 = vadd.f32 %v1197_v43, %v1196_v7  ;;  %v1421_v26 = vrot.slane %v1420_v19, 4 }
  0xac   : > { %v863_v6 = vrot.slane %v862_v36, 2  ;;  %v975_v8 = vrot.slane %v974_v50, 2  ;;  %v1087_v51 = vrot.slane %v1086_v45, 2  ;;  %v1310_v13 = vadd.f32 %v1309_v46, %v1308_v5 }
  0xad   : > { %v640_v40 = vadd.f32 %v639_v57, %v638_v42  ;;  %v752_v39 = vadd.f32 %v751_v55, %v750_v60  ;;  %v1199_v32 = vrot.slane %v1198_v63, 2  ;;  %v1422_v53 = vadd.f32 %v1421_v26, %v1420_v19  ;;  %v4606_v60 = vld [vmem:[%s4335_s25 + $0x10] sm:$0xff] }
  0xae   : > { %3171 = vmatpush.bf16.msra.mxu1 %v3966_v49  ;;  %v864_v15 = vadd.f32 %v863_v6, %v862_v36  ;;  %v976_v22 = vadd.f32 %v975_v8, %v974_v50  ;;  %v1088_v20 = vadd.f32 %v1087_v51, %v1086_v45  ;;  %v1311_v47 = vrot.slane %v1310_v13, 2  ;;  %v4609_v50 = vld [vmem:[%s4335_s25 + $0x50] sm:$0xff] }
  0xaf   : > { %v641_v38 = vrot.slane %v640_v40, 1  ;;  %v753_v61 = vrot.slane %v752_v39, 1  ;;  %v1200_v59 = vadd.f32 %v1199_v32, %v1198_v63  ;;  %v1423_v3 = vrot.slane %v1422_v53, 2  ;;  %v4612_v45 = vld [vmem:[%s4335_s25 + $0x90] sm:$0xff] }
  0xb0   : > { %v865_v23 = vrot.slane %v864_v15, 1  ;;  %v977_v30 = vrot.slane %v976_v22, 1  ;;  %v1089_v4 = vrot.slane %v1088_v20, 1  ;;  %v1312_v9 = vadd.f32 %v1311_v47, %v1310_v13  ;;  %v4615_v26 = vld [vmem:[%s4335_s25 + $0xd0] sm:$0xff] }
  0xb1   : > { %v642_v62 = vadd.f32 %v641_v38, %v640_v40  ;;  %v754_v10 = vadd.f32 %v753_v61, %v752_v39  ;;  %v1201_v14 = vrot.slane %v1200_v59, 1  ;;  %v1424_v58 = vadd.f32 %v1423_v3, %v1422_v53  ;;  %v4618_v6 = vld [vmem:[%s4335_s25 + $0x110] sm:$0xff] }
  0xb2   : > { %v866_v27 = vadd.f32 %v865_v23, %v864_v15  ;;  %v978_v21 = vadd.f32 %v977_v30, %v976_v22  ;;  %v1090_v28 = vadd.f32 %v1089_v4, %v1088_v20  ;;  %v1313_v11 = vrot.slane %v1312_v9, 1  ;;  %v4622_v40 = vld [vmem:[%s4335_s25 + $0x150] sm:$0xff] }
  0xb3   : > { %v1202_v33 = vadd.f32 %v1201_v14, %v1200_v59  ;;  %v1425_v16 = vrot.slane %v1424_v58, 1  ;;  %v1496_v7 = vpack.c.bf16 %v642_v62, %v642_v62  ;;  %v1512_v17 = vpack.c.bf16 %v754_v10, %v754_v10  ;;  %v4625_v39 = vld [vmem:[%s4335_s25 + $0x190] sm:$0xff] }
  0xb4   : > { %v1314_v34 = vadd.f32 %v1313_v11, %v1312_v9  ;;  %v1528_v35 = vpack.c.bf16 %v866_v27, %v866_v27  ;;  %v1544_v5 = vpack.c.bf16 %v978_v21, %v978_v21  ;;  %v1560_v42 = vpack.c.bf16 %v1090_v28, %v1090_v28  ;;  %v4628_v32 = vld [vmem:[%s4335_s25 + $0x1d0] sm:$0xff] }
  0xb5   : > { %v1426_v43 = vadd.f32 %v1425_v16, %v1424_v58  ;;  %v1576_v19 = vpack.c.bf16 %v1202_v33, %v1202_v33  ;;  %v2012_v49 = vunpack.c.l.b16 %v1496_v7  ;;  %v2028_v36 = vunpack.c.l.b16 %v1512_v17  ;;  %v4633_v20 = vld [vmem:[%s4335_s25 + $0x210] sm:$0xff] }
  0xb6   : > { %v1592_v46 = vpack.c.bf16 %v1314_v34, %v1314_v34  ;;  %v2044_v57 = vunpack.c.l.b16 %v1528_v35  ;;  %v2060_v55 = vunpack.c.l.b16 %v1544_v5  ;;  %v2076_v63 = vunpack.c.l.b16 %v1560_v42  ;;  %v4636_v47 = vld [vmem:[%s4335_s25 + $0x250] sm:$0xff] }
  0xb7   : > { %v1608_v8 = vpack.c.bf16 %v1426_v43, %v1426_v43  ;;  %v2092_v51 = vunpack.c.l.b16 %v1576_v19  ;;  %v2183_v13 = vsel %vm2134_vm0, %v2028_v36, %v2012_v49  ;;  %v342_v53 = vunpack.c.l.bf16 %v4606_v60  ;;  %v4639_v38 = vld [vmem:[%s4335_s25 + $0x290] sm:$0xff] }
  0xb8   : > { %v2108_v15 = vunpack.c.l.b16 %v1592_v46  ;;  %v2184_v22 = vsel %vm2136_vm1, %v2044_v57, %v2183_v13  ;;  %v358_v61 = vunpack.c.l.bf16 %v4609_v50  ;;  %v374_v59 = vunpack.c.l.bf16 %v4612_v45  ;;  %v4645_v30 = vld [vmem:[%s4335_s25 + $0x2d0] sm:$0xff] }
  0xb9   : > { %v2124_v3 = vunpack.c.l.b16 %v1608_v8  ;;  %v2185_v23 = vsel %vm2138_vm2, %v2060_v55, %v2184_v22  ;;  %v4648_v4 = vld [vmem:[%s4335_s25 + $0x310] sm:$0xff]  ;;  %v390_v62 = vunpack.c.l.bf16 %v4615_v26  ;;  %v406_v10 = vunpack.c.l.bf16 %v4618_v6 }
  0xba   : > { %5189 = vst [vmem:[#allocation11_spill] sm:$0xff] %v4648_v4  ;;  %v4651_v9 = vld [vmem:[%s4335_s25 + $0x350] sm:$0xff]  ;;  %v2186_v14 = vsel %vm2140_vm3, %v2076_v63, %v2185_v23  ;;  %v422_v21 = vunpack.c.l.bf16 %v4622_v40  ;;  %v438_v28 = vunpack.c.l.bf16 %v4625_v39  ;;  %v454_v11 = vunpack.c.l.bf16 %v4628_v32 }
  0xbb   : > { %5190 = vst [vmem:[#allocation12_spill] sm:$0xff] %v4651_v9  ;;  %v4657_v58 = vld [vmem:[%s4335_s25 + $0x390] sm:$0xff]  ;;  %v2187_v33 = vsel %vm2142_vm4, %v2092_v51, %v2186_v14  ;;  %v470_v16 = vunpack.c.l.bf16 %v4633_v20  ;;  %v486_v7 = vunpack.c.l.bf16 %v4636_v47  ;;  %v502_v17 = vunpack.c.l.bf16 %v4639_v38 }
  0xbc   : > { %5191 = vst [vmem:[#allocation13_spill] sm:$0xff] %v4657_v58  ;;  %v4660_v27 = vld [vmem:[%s4335_s25 + $0x3d0] sm:$0xff]  ;;  %v2188_v34 = vsel %vm2144_vm5, %v2108_v15, %v2187_v33  ;;  %v518_v35 = vunpack.c.l.bf16 %v4645_v30  ;;  %v534_v5 = vunpack.c.l.bf16 %v4648_v4  ;;  %v550_v42 = vunpack.c.l.bf16 %v4651_v9 }
  0xbd   : > { %5192 = vst [vmem:[#allocation14_spill] sm:$0xff] %v4660_v27  ;;  %v2189_v43 = vsel %vm2146_vm6, %v2124_v3, %v2188_v34  ;;  %v566_v19 = vunpack.c.l.bf16 %v4657_v58  ;;  %v582_v49 = vunpack.c.l.bf16 %v4660_v27  ;;  %v622_v36 = vadd.f32 %v358_v61, %v342_v53 }
  0xbe   : > { %v2259_v46 = vpack.c.b16 %v2189_v43, %v2189_v43  ;;  %v734_v57 = vadd.f32 %v390_v62, %v374_v59  ;;  %v846_v55 = vadd.f32 %v422_v21, %v406_v10  ;;  %v958_v63 = vadd.f32 %v454_v11, %v438_v28 }
  0xbf   : > { %v623_v8 = vrot.slane %v622_v36, 4  ;;  %v1070_v51 = vadd.f32 %v486_v7, %v470_v16  ;;  %v1182_v13 = vadd.f32 %v518_v35, %v502_v17  ;;  %v1294_v15 = vadd.f32 %v550_v42, %v534_v5 }
  0xc0   : > { %3139 = vmatmul.bf16.vlgmr.msrb.gmra.mxu2 %v2259_v46  ;;  %v735_v22 = vrot.slane %v734_v57, 4  ;;  %v847_v23 = vrot.slane %v846_v55, 4  ;;  %v959_v14 = vrot.slane %v958_v63, 4  ;;  %v1406_v33 = vadd.f32 %v582_v49, %v566_v19 }
  0xc1   : > { %v624_v9 = vadd.f32 %v623_v8, %v622_v36  ;;  %v1071_v3 = vrot.slane %v1070_v51, 4  ;;  %v1183_v34 = vrot.slane %v1182_v13, 4  ;;  %v1295_v58 = vrot.slane %v1294_v15, 4 }
  0xc2   : > { %v736_v4 = vadd.f32 %v735_v22, %v734_v57  ;;  %v848_v27 = vadd.f32 %v847_v23, %v846_v55  ;;  %v960_v53 = vadd.f32 %v959_v14, %v958_v63  ;;  %v1407_v61 = vrot.slane %v1406_v33, 4 }
  0xc3   : > { %v625_v59 = vrot.slane %v624_v9, 2  ;;  %v1072_v62 = vadd.f32 %v1071_v3, %v1070_v51  ;;  %v1184_v10 = vadd.f32 %v1183_v34, %v1182_v13  ;;  %v1296_v21 = vadd.f32 %v1295_v58, %v1294_v15 }
  0xc4   : > { %v737_v28 = vrot.slane %v736_v4, 2  ;;  %v849_v11 = vrot.slane %v848_v27, 2  ;;  %v961_v16 = vrot.slane %v960_v53, 2  ;;  %v1408_v7 = vadd.f32 %v1407_v61, %v1406_v33 }
  0xc5   : > { %v626_v17 = vadd.f32 %v625_v59, %v624_v9  ;;  %v1073_v35 = vrot.slane %v1072_v62, 2  ;;  %v1185_v5 = vrot.slane %v1184_v10, 2  ;;  %v1297_v42 = vrot.slane %v1296_v21, 2 }
  0xc6   : > { %v738_v43 = vadd.f32 %v737_v28, %v736_v4  ;;  %v850_v19 = vadd.f32 %v849_v11, %v848_v27  ;;  %v962_v49 = vadd.f32 %v961_v16, %v960_v53  ;;  %v1409_v36 = vrot.slane %v1408_v7, 2 }
  0xc7   : > { %v627_v46 = vrot.slane %v626_v17, 1  ;;  %v1074_v57 = vadd.f32 %v1073_v35, %v1072_v62  ;;  %v1186_v55 = vadd.f32 %v1185_v5, %v1184_v10  ;;  %v1298_v63 = vadd.f32 %v1297_v42, %v1296_v21 }
  0xc8   : > { %v739_v8 = vrot.slane %v738_v43, 1  ;;  %v851_v51 = vrot.slane %v850_v19, 1  ;;  %v963_v13 = vrot.slane %v962_v49, 1  ;;  %v1410_v58 = vadd.f32 %v1409_v36, %v1408_v7 }
  0xc9   : > { %v628_v15 = vadd.f32 %v627_v46, %v626_v17  ;;  %v1075_v22 = vrot.slane %v1074_v57, 1  ;;  %v1187_v23 = vrot.slane %v1186_v55, 1  ;;  %v1299_v14 = vrot.slane %v1298_v63, 1 }
  0xca   : > { %v740_v9 = vadd.f32 %v739_v8, %v738_v43  ;;  %v852_v33 = vadd.f32 %v851_v51, %v850_v19  ;;  %v964_v3 = vadd.f32 %v963_v13, %v962_v49  ;;  %v1411_v34 = vrot.slane %v1410_v58, 1  ;;  %v3957_v43 = vld [vmem:[#allocation5 + $0x228] sm:$0xff] }
  0xcb   : > { %v1076_v4 = vadd.f32 %v1075_v22, %v1074_v57  ;;  %v1188_v27 = vadd.f32 %v1187_v23, %v1186_v55  ;;  %v1300_v53 = vadd.f32 %v1299_v14, %v1298_v63  ;;  %v1494_v61 = vpack.c.bf16 %v628_v15, %v628_v15  ;;  %v3965_v19 = vld [vmem:[#allocation5 + $0x268] sm:$0xff]  ;;  %3159 = vmatpush.bf16.msra.mxu0 %v3957_v43 }
  0xcc   : > { %v1412_v59 = vadd.f32 %v1411_v34, %v1410_v58  ;;  %v1510_v62 = vpack.c.bf16 %v740_v9, %v740_v9  ;;  %v1526_v10 = vpack.c.bf16 %v852_v33, %v852_v33  ;;  %v1542_v21 = vpack.c.bf16 %v964_v3, %v964_v3  ;;  %v3973_v49 = vld [vmem:[#allocation5 + $0x2a8] sm:$0xff]  ;;  %3172 = vmatpush.bf16.msra.mxu1 %v3965_v19 }
  0xcd   : > { %v1558_v28 = vpack.c.bf16 %v1076_v4, %v1076_v4  ;;  %v1574_v11 = vpack.c.bf16 %v1188_v27, %v1188_v27  ;;  %v1590_v16 = vpack.c.bf16 %v1300_v53, %v1300_v53  ;;  %v2010_v7 = vunpack.c.l.b16 %v1494_v61  ;;  %v3981_v63 = vld [vmem:[#allocation5 + $0x2e8] sm:$0xff]  ;;  %3185 = vmatpush.bf16.msra.mxu2 %v3973_v49 }
  0xce   : > { %v1606_v17 = vpack.c.bf16 %v1412_v59, %v1412_v59  ;;  %v2026_v35 = vunpack.c.l.b16 %v1510_v62  ;;  %v2042_v5 = vunpack.c.l.b16 %v1526_v10  ;;  %v2058_v42 = vunpack.c.l.b16 %v1542_v21  ;;  %3198 = vmatpush.bf16.msra.mxu3 %v3981_v63 }
  0xcf   : > { %v2074_v36 = vunpack.c.l.b16 %v1558_v28  ;;  %v2090_v46 = vunpack.c.l.b16 %v1574_v11  ;;  %v2106_v57 = vunpack.c.l.b16 %v1590_v16  ;;  %v345_v55 = vunpack.c.h.bf16 %v4535_v41 }
  0xd0   : > { %v2122_v8 = vunpack.c.l.b16 %v1606_v17  ;;  %v2169_v51 = vsel %vm2134_vm0, %v2026_v35, %v2010_v7  ;;  %v361_v13 = vunpack.c.h.bf16 %v4538_v48  ;;  %v377_v58 = vunpack.c.h.bf16 %v4541_v12 }
  0xd1   : > { %v2170_v15 = vsel %vm2136_vm1, %v2042_v5, %v2169_v51  ;;  %v393_v22 = vunpack.c.h.bf16 %v4544_v37  ;;  %v409_v23 = vunpack.c.h.bf16 %v4547_v56  ;;  %v425_v14 = vunpack.c.h.bf16 %v4550_v44 }
  0xd2   : > { %v2171_v41 = vsel %vm2138_vm2, %v2058_v42, %v2170_v15  ;;  %v441_v9 = vunpack.c.h.bf16 %v4553_v54  ;;  %v457_v48 = vunpack.c.h.bf16 %v4556_v24  ;;  %v473_v12 = vunpack.c.h.bf16 %v4559_v25 }
  0xd3   : > { %v2172_v33 = vsel %vm2140_vm3, %v2074_v36, %v2171_v41  ;;  %v489_v3 = vunpack.c.h.bf16 %v4564_v0  ;;  %v505_v37 = vunpack.c.h.bf16 %v4567_v1  ;;  %v521_v56 = vunpack.c.h.bf16 %v4570_v2 }
  0xd4   : > { %v2173_v44 = vsel %vm2142_vm4, %v2090_v46, %v2172_v33  ;;  %v537_v34 = vunpack.c.h.bf16 %v4576_v31  ;;  %v553_v4 = vunpack.c.h.bf16 %v4579_v29  ;;  %v569_v54 = vunpack.c.h.bf16 %v4582_v52 }
  0xd5   : > { %v2174_v24 = vsel %vm2144_vm5, %v2106_v57, %v2173_v44  ;;  %v585_v25 = vunpack.c.h.bf16 %v4589_v18  ;;  %v643_v27 = vadd.f32 %v361_v13, %v345_v55  ;;  %v755_v53 = vadd.f32 %v393_v22, %v377_v58 }
  0xd6   : > { %v2175_v0 = vsel %vm2146_vm6, %v2122_v8, %v2174_v24  ;;  %v867_v61 = vadd.f32 %v425_v14, %v409_v23  ;;  %v979_v1 = vadd.f32 %v457_v48, %v441_v9  ;;  %v1091_v59 = vadd.f32 %v489_v3, %v473_v12 }
  0xd7   : > { %v2257_v2 = vpack.c.b16 %v2175_v0, %v2175_v0  ;;  %v644_v62 = vrot.slane %v643_v27, 4  ;;  %v756_v10 = vrot.slane %v755_v53, 4  ;;  %v1203_v21 = vadd.f32 %v521_v56, %v505_v37 }
  0xd8   : > { %v868_v31 = vrot.slane %v867_v61, 4  ;;  %v980_v28 = vrot.slane %v979_v1, 4  ;;  %v1092_v29 = vrot.slane %v1091_v59, 4  ;;  %v1315_v11 = vadd.f32 %v553_v4, %v537_v34 }
  0xd9   : > { %3113 = vmatmul.bf16.vlgmr.msrb.gmra.mxu0 %v2257_v2  ;;  %v645_v52 = vadd.f32 %v644_v62, %v643_v27  ;;  %v757_v16 = vadd.f32 %v756_v10, %v755_v53  ;;  %v1204_v7 = vrot.slane %v1203_v21, 4  ;;  %v1427_v18 = vadd.f32 %v585_v25, %v569_v54 }
  0xda   : > { %v869_v17 = vadd.f32 %v868_v31, %v867_v61  ;;  %v981_v35 = vadd.f32 %v980_v28, %v979_v1  ;;  %v1093_v5 = vadd.f32 %v1092_v29, %v1091_v59  ;;  %v1316_v42 = vrot.slane %v1315_v11, 4 }
  0xdb   : > { %v646_v43 = vrot.slane %v645_v52, 2  ;;  %v758_v19 = vrot.slane %v757_v16, 2  ;;  %v1205_v49 = vadd.f32 %v1204_v7, %v1203_v21  ;;  %v1428_v36 = vrot.slane %v1427_v18, 4 }
  0xdc   : > { %v870_v46 = vrot.slane %v869_v17, 2  ;;  %v982_v57 = vrot.slane %v981_v35, 2  ;;  %v1094_v55 = vrot.slane %v1093_v5, 2  ;;  %v1317_v63 = vadd.f32 %v1316_v42, %v1315_v11 }
  0xdd   : > { %v647_v8 = vadd.f32 %v646_v43, %v645_v52  ;;  %v759_v51 = vadd.f32 %v758_v19, %v757_v16  ;;  %v1206_v13 = vrot.slane %v1205_v49, 2  ;;  %v1429_v58 = vadd.f32 %v1428_v36, %v1427_v18 }
  0xde   : > { %v871_v15 = vadd.f32 %v870_v46, %v869_v17  ;;  %v983_v22 = vadd.f32 %v982_v57, %v981_v35  ;;  %v1095_v23 = vadd.f32 %v1094_v55, %v1093_v5  ;;  %v1318_v14 = vrot.slane %v1317_v63, 2 }
  0xdf   : > { %v648_v41 = vrot.slane %v647_v8, 1  ;;  %v760_v9 = vrot.slane %v759_v51, 1  ;;  %v1207_v48 = vadd.f32 %v1206_v13, %v1205_v49  ;;  %v1430_v12 = vrot.slane %v1429_v58, 2  ;;  %v3972_v13 = vld [vmem:[#allocation5 + $0x2a0] sm:$0xff] }
  0xe0   : > { %v872_v33 = vrot.slane %v871_v15, 1  ;;  %v984_v3 = vrot.slane %v983_v22, 1  ;;  %v1096_v37 = vrot.slane %v1095_v23, 1  ;;  %v1319_v56 = vadd.f32 %v1318_v14, %v1317_v63  ;;  %v3955_v14 = vld [vmem:[#allocation5 + $0x218] sm:$0xff]  ;;  %3186 = vmatpush.bf16.msra.mxu2 %v3972_v13 }
  0xe1   : > { %v649_v44 = vadd.f32 %v648_v41, %v647_v8  ;;  %v761_v34 = vadd.f32 %v760_v9, %v759_v51  ;;  %v1208_v4 = vrot.slane %v1207_v48, 1  ;;  %v1431_v54 = vadd.f32 %v1430_v12, %v1429_v58  ;;  %v3956_v8 = vld [vmem:[#allocation5 + $0x220] sm:$0xff]  ;;  %v3963_v41 = vld [vmem:[#allocation5 + $0x258] sm:$0xff] }
  0xe2   : > { %v873_v24 = vadd.f32 %v872_v33, %v871_v15  ;;  %v985_v25 = vadd.f32 %v984_v3, %v983_v22  ;;  %v1097_v27 = vadd.f32 %v1096_v37, %v1095_v23  ;;  %v1320_v53 = vrot.slane %v1319_v56, 1  ;;  %v3964_v51 = vld [vmem:[#allocation5 + $0x260] sm:$0xff]  ;;  %3160 = vmatpush.bf16.msra.mxu0 %v3956_v8  ;;  %v3971_v33 = vld [vmem:[#allocation5 + $0x298] sm:$0xff] }
  0xe3   : > { %v1209_v0 = vadd.f32 %v1208_v4, %v1207_v48  ;;  %v1432_v61 = vrot.slane %v1431_v54, 1  ;;  %v1497_v1 = vpack.c.bf16 %v649_v44, %v649_v44  ;;  %v1513_v59 = vpack.c.bf16 %v761_v34, %v761_v34  ;;  %v3980_v22 = vld [vmem:[#allocation5 + $0x2e0] sm:$0xff]  ;;  %3173 = vmatpush.bf16.msra.mxu1 %v3964_v51  ;;  %v3979_v44 = vld [vmem:[#allocation5 + $0x2d8] sm:$0xff] }
  0xe4   : > { %v1321_v2 = vadd.f32 %v1320_v53, %v1319_v56  ;;  %v1529_v62 = vpack.c.bf16 %v873_v24, %v873_v24  ;;  %v1545_v10 = vpack.c.bf16 %v985_v25, %v985_v25  ;;  %v1561_v21 = vpack.c.bf16 %v1097_v27, %v1097_v27  ;;  %3199 = vmatpush.bf16.msra.mxu3 %v3980_v22 }
  0xe5   : > { %v1433_v31 = vadd.f32 %v1432_v61, %v1431_v54  ;;  %v1577_v28 = vpack.c.bf16 %v1209_v0, %v1209_v0  ;;  %v2013_v29 = vunpack.c.l.b16 %v1497_v1  ;;  %v2029_v11 = vunpack.c.l.b16 %v1513_v59  ;;  %v3954_v0 = vld [vmem:[#allocation5 + $0x210] sm:$0xff]  ;;  %3187 = vmatpush.bf16.msra.mxu2 %v3971_v33 }
  0xe6   : > { %v1593_v52 = vpack.c.bf16 %v1321_v2, %v1321_v2  ;;  %v2045_v16 = vunpack.c.l.b16 %v1529_v62  ;;  %v2061_v7 = vunpack.c.l.b16 %v1545_v10  ;;  %v2077_v18 = vunpack.c.l.b16 %v1561_v21  ;;  %3161 = vmatpush.bf16.msra.mxu0 %v3955_v14  ;;  %v3962_v61 = vld [vmem:[#allocation5 + $0x250] sm:$0xff]  ;;  %v3952_v14 = vld [vmem:[#allocation5 + $0x200] sm:$0xff] }
  0xe7   : > { %v1609_v17 = vpack.c.bf16 %v1433_v31, %v1433_v31  ;;  %v2093_v35 = vunpack.c.l.b16 %v1577_v28  ;;  %v2190_v5 = vsel %vm2134_vm0, %v2029_v11, %v2013_v29  ;;  %v343_v42 = vunpack.c.h.bf16 %v4606_v60  ;;  %3174 = vmatpush.bf16.msra.mxu1 %v3963_v41  ;;  %v3970_v10 = vld [vmem:[#allocation5 + $0x290] sm:$0xff] }
  0xe8   : > { %v2109_v43 = vunpack.c.l.b16 %v1593_v52  ;;  %v2191_v19 = vsel %vm2136_vm1, %v2045_v16, %v2190_v5  ;;  %v359_v49 = vunpack.c.h.bf16 %v4609_v50  ;;  %v375_v36 = vunpack.c.h.bf16 %v4612_v45  ;;  %3200 = vmatpush.bf16.msra.mxu3 %v3979_v44  ;;  %v3978_v11 = vld [vmem:[#allocation5 + $0x2d0] sm:$0xff] }
  0xe9   : > { %v2125_v46 = vunpack.c.l.b16 %v1609_v17  ;;  %v2192_v57 = vsel %vm2138_vm2, %v2061_v7, %v2191_v19  ;;  %v391_v55 = vunpack.c.h.bf16 %v4615_v26  ;;  %v407_v63 = vunpack.c.h.bf16 %v4618_v6  ;;  %v3961_v19 = vld [vmem:[#allocation5 + $0x248] sm:$0xff]  ;;  %3188 = vmatpush.bf16.msra.mxu2 %v3970_v10 }
  0xea   : > { %v2193_v58 = vsel %vm2140_vm3, %v2077_v18, %v2192_v57  ;;  %v423_v60 = vunpack.c.h.bf16 %v4622_v40  ;;  %v439_v15 = vunpack.c.h.bf16 %v4625_v39  ;;  %v455_v50 = vunpack.c.h.bf16 %v4628_v32  ;;  %v5193_v39 = vld [vmem:[#allocation11_spill] sm:$0xff]  ;;  %v5194_v32 = vld [vmem:[#allocation12_spill] sm:$0xff]  ;;  %3162 = vmatpush.bf16.msra.mxu0 %v3954_v0 }
  0xeb   : > { %v2194_v45 = vsel %vm2142_vm4, %v2093_v35, %v2193_v58  ;;  %v471_v23 = vunpack.c.h.bf16 %v4633_v20  ;;  %v487_v26 = vunpack.c.h.bf16 %v4636_v47  ;;  %v503_v6 = vunpack.c.h.bf16 %v4639_v38  ;;  %v5195_v47 = vld [vmem:[#allocation13_spill] sm:$0xff]  ;;  %v5196_v38 = vld [vmem:[#allocation14_spill] sm:$0xff]  ;;  %3175 = vmatpush.bf16.msra.mxu1 %v3962_v61 }
  0xec   : > { %v2195_v9 = vsel %vm2144_vm5, %v2109_v43, %v2194_v45  ;;  %v519_v40 = vunpack.c.h.bf16 %v4645_v30  ;;  %v535_v48 = vunpack.c.h.bf16 %v5193_v39  ;;  %v551_v12 = vunpack.c.h.bf16 %v5194_v32  ;;  %v3953_v43 = vld [vmem:[#allocation5 + $0x208] sm:$0xff]  ;;  %3201 = vmatpush.bf16.msra.mxu3 %v3978_v11 }
  0xed   : > { %v2196_v20 = vsel %vm2146_vm6, %v2125_v46, %v2195_v9  ;;  %v567_v3 = vunpack.c.h.bf16 %v5195_v47  ;;  %v583_v37 = vunpack.c.h.bf16 %v5196_v38  ;;  %v629_v56 = vadd.f32 %v359_v49, %v343_v42  ;;  %v3977_v58 = vld [vmem:[#allocation5 + $0x2c8] sm:$0xff]  ;;  %v3968_v47 = vld [vmem:[#allocation5 + $0x280] sm:$0xff] }
  0xee   : > { %v2260_v34 = vpack.c.b16 %v2196_v20, %v2196_v20  ;;  %v741_v4 = vadd.f32 %v391_v55, %v375_v36  ;;  %v853_v54 = vadd.f32 %v423_v60, %v407_v63  ;;  %v965_v24 = vadd.f32 %v455_v50, %v439_v15  ;;  %v3969_v55 = vld [vmem:[#allocation5 + $0x288] sm:$0xff]  ;;  %3163 = vmatpush.bf16.msra.mxu0 %v3953_v43  ;;  %v4741_v43 = vld [vmem:[%s4335_s25 + $0x1a0] sm:$0xff] }
  0xef   : > { %v630_v30 = vrot.slane %v629_v56, 4  ;;  %v1077_v25 = vadd.f32 %v487_v26, %v471_v23  ;;  %v1189_v27 = vadd.f32 %v519_v40, %v503_v6  ;;  %v1301_v53 = vadd.f32 %v551_v12, %v535_v48  ;;  %3176 = vmatpush.bf16.msra.mxu1 %v3961_v19  ;;  %3189 = vmatpush.bf16.msra.mxu2 %v3969_v55  ;;  %v3960_v48 = vld [vmem:[#allocation5 + $0x240] sm:$0xff] }
  0xf0   : > { %3152 = vmatmul.bf16.vlgmr.msrb.gmra.mxu3 %v2260_v34  ;;  %v742_v1 = vrot.slane %v741_v4, 4  ;;  %v854_v59 = vrot.slane %v853_v54, 4  ;;  %v966_v2 = vrot.slane %v965_v24, 4  ;;  %v1413_v62 = vadd.f32 %v583_v37, %v567_v3  ;;  %v3976_v3 = vld [vmem:[#allocation5 + $0x2c0] sm:$0xff]  ;;  %v3991_v34 = vld [vmem:[#allocation5 + $0x338] sm:$0xff] }
  0xf1   : > { %v631_v21 = vadd.f32 %v630_v30, %v629_v56  ;;  %v1078_v31 = vrot.slane %v1077_v25, 4  ;;  %v1190_v28 = vrot.slane %v1189_v27, 4  ;;  %v1302_v29 = vrot.slane %v1301_v53, 4  ;;  %3202 = vmatpush.bf16.msra.mxu3 %v3977_v58  ;;  %v4744_v19 = vld [vmem:[%s4335_s25 + $0x1e0] sm:$0xff] }
  0xf2   : > { %v743_v52 = vadd.f32 %v742_v1, %v741_v4  ;;  %v855_v16 = vadd.f32 %v854_v59, %v853_v54  ;;  %v967_v7 = vadd.f32 %v966_v2, %v965_v24  ;;  %v1414_v18 = vrot.slane %v1413_v62, 4  ;;  %v4007_v4 = vld [vmem:[#allocation5 + $0x3b8] sm:$0xff]  ;;  %3164 = vmatpush.bf16.msra.mxu0 %v3952_v14  ;;  %v4723_v59 = vld [vmem:[%s4335_s25 + $0x20] sm:$0xff] }
  0xf3   : > { %v632_v17 = vrot.slane %v631_v21, 2  ;;  %v1079_v35 = vadd.f32 %v1078_v31, %v1077_v25  ;;  %v1191_v5 = vadd.f32 %v1190_v28, %v1189_v27  ;;  %v1303_v42 = vadd.f32 %v1302_v29, %v1301_v53  ;;  %v4015_v27 = vld [vmem:[#allocation5 + $0x3f8] sm:$0xff]  ;;  %3177 = vmatpush.bf16.msra.mxu1 %v3960_v48  ;;  %3190 = vmatpush.bf16.msra.mxu2 %v3968_v47  ;;  %v4726_v31 = vld [vmem:[%s4335_s25 + $0x60] sm:$0xff] }
  0xf4   : > { %v744_v49 = vrot.slane %v743_v52, 2  ;;  %v856_v36 = vrot.slane %v855_v16, 2  ;;  %v968_v46 = vrot.slane %v967_v7, 2  ;;  %v1415_v57 = vadd.f32 %v1414_v18, %v1413_v62  ;;  %v4729_v28 = vld [vmem:[%s4335_s25 + $0xa0] sm:$0xff] }
  0xf5   : > { %v633_v63 = vadd.f32 %v632_v17, %v631_v21  ;;  %v1080_v8 = vrot.slane %v1079_v35, 2  ;;  %v1192_v51 = vrot.slane %v1191_v5, 2  ;;  %v1304_v13 = vrot.slane %v1303_v42, 2  ;;  %3203 = vmatpush.bf16.msra.mxu3 %v3976_v3  ;;  %v4735_v18 = vld [vmem:[%s4335_s25 + $0x120] sm:$0xff] }
  0xf6   : > { %v745_v60 = vadd.f32 %v744_v49, %v743_v52  ;;  %v857_v15 = vadd.f32 %v856_v36, %v855_v16  ;;  %v969_v50 = vadd.f32 %v968_v46, %v967_v7  ;;  %v1416_v22 = vrot.slane %v1415_v57, 2  ;;  %3209 = vmatpush.bf16.msrb.mxu0 %v3991_v34  ;;  %v4732_v7 = vld [vmem:[%s4335_s25 + $0xe0] sm:$0xff]  ;;  %v3999_v34 = vld [vmem:[#allocation5 + $0x378] sm:$0xff] }
  0xf7   : > { %v634_v45 = vrot.slane %v633_v63, 1  ;;  %v1081_v23 = vadd.f32 %v1080_v8, %v1079_v35  ;;  %v1193_v26 = vadd.f32 %v1192_v51, %v1191_v5  ;;  %v1305_v6 = vadd.f32 %v1304_v13, %v1303_v42  ;;  %3235 = vmatpush.bf16.msrb.mxu2 %v4007_v4  ;;  %v4738_v17 = vld [vmem:[%s4335_s25 + $0x160] sm:$0xff] }
  0xf8   : > { %v746_v41 = vrot.slane %v745_v60, 1  ;;  %v858_v9 = vrot.slane %v857_v15, 1  ;;  %v970_v40 = vrot.slane %v969_v50, 1  ;;  %v1417_v39 = vadd.f32 %v1416_v22, %v1415_v57  ;;  %v4747_v49 = vld [vmem:[%s4335_s25 + $0x220] sm:$0xff] }
  0xf9   : > { %v635_v32 = vadd.f32 %v634_v45, %v633_v63  ;;  %v1082_v12 = vrot.slane %v1081_v23, 1  ;;  %v1194_v33 = vrot.slane %v1193_v26, 1  ;;  %v1306_v20 = vrot.slane %v1305_v6, 1  ;;  %3248 = vmatpush.bf16.msrb.mxu3 %v4015_v27  ;;  %v4752_v55 = vld [vmem:[%s4335_s25 + $0x260] sm:$0xff] }
  0xfa   : > { %v747_v38 = vadd.f32 %v746_v41, %v745_v60  ;;  %v859_v37 = vadd.f32 %v858_v9, %v857_v15  ;;  %v971_v56 = vadd.f32 %v970_v40, %v969_v50  ;;  %v1418_v44 = vrot.slane %v1417_v39, 1  ;;  %v4755_v63 = vld [vmem:[%s4335_s25 + $0x2a0] sm:$0xff] }
  0xfb   : > { %v1083_v54 = vadd.f32 %v1082_v12, %v1081_v23  ;;  %v1195_v24 = vadd.f32 %v1194_v33, %v1193_v26  ;;  %v1307_v30 = vadd.f32 %v1306_v20, %v1305_v6  ;;  %v1495_v25 = vpack.c.bf16 %v635_v32, %v635_v32  ;;  %v4758_v8 = vld [vmem:[%s4335_s25 + $0x2e0] sm:$0xff] }
  0xfc   : > { %v1419_v53 = vadd.f32 %v1418_v44, %v1417_v39  ;;  %v1511_v0 = vpack.c.bf16 %v747_v38, %v747_v38  ;;  %v1527_v61 = vpack.c.bf16 %v859_v37, %v859_v37  ;;  %v1543_v1 = vpack.c.bf16 %v971_v56, %v971_v56  ;;  %v4764_v60 = vld [vmem:[%s4335_s25 + $0x320] sm:$0xff] }
  0xfd   : > { %v1559_v2 = vpack.c.bf16 %v1083_v54, %v1083_v54  ;;  %v1575_v62 = vpack.c.bf16 %v1195_v24, %v1195_v24  ;;  %v1591_v10 = vpack.c.bf16 %v1307_v30, %v1307_v30  ;;  %v2011_v21 = vunpack.c.l.b16 %v1495_v25  ;;  %v4767_v15 = vld [vmem:[%s4335_s25 + $0x360] sm:$0xff] }
  0xfe   : > { %v1607_v29 = vpack.c.bf16 %v1419_v53, %v1419_v53  ;;  %v2027_v11 = vunpack.c.l.b16 %v1511_v0  ;;  %v2043_v52 = vunpack.c.l.b16 %v1527_v61  ;;  %v2059_v16 = vunpack.c.l.b16 %v1543_v1  ;;  %v4770_v50 = vld [vmem:[%s4335_s25 + $0x3a0] sm:$0xff] }
  0xff   : > { %v2075_v35 = vunpack.c.l.b16 %v1559_v2  ;;  %v2091_v5 = vunpack.c.l.b16 %v1575_v62  ;;  %v2107_v42 = vunpack.c.l.b16 %v1591_v10  ;;  %v346_v36 = vunpack.c.l.bf16 %v4723_v59  ;;  %v4777_v6 = vld [vmem:[%s4335_s25 + $0x3e0] sm:$0xff] }
 0x100   : > { %v2123_v46 = vunpack.c.l.b16 %v1607_v29  ;;  %v2176_v57 = vsel %vm2134_vm0, %v2027_v11, %v2011_v21  ;;  %v362_v51 = vunpack.c.l.bf16 %v4726_v31  ;;  %v378_v13 = vunpack.c.l.bf16 %v4729_v28 }
 0x101   : > { %v2177_v58 = vsel %vm2136_vm1, %v2043_v52, %v2176_v57  ;;  %v394_v22 = vunpack.c.l.bf16 %v4732_v7  ;;  %v410_v45 = vunpack.c.l.bf16 %v4735_v18  ;;  %v426_v23 = vunpack.c.l.bf16 %v4738_v17 }
 0x102   : > { %v2178_v26 = vsel %vm2138_vm2, %v2059_v16, %v2177_v58  ;;  %v442_v14 = vunpack.c.l.bf16 %v4741_v43  ;;  %v458_v41 = vunpack.c.l.bf16 %v4744_v19  ;;  %v474_v9 = vunpack.c.l.bf16 %v4747_v49 }
 0x103   : > { %v2179_v40 = vsel %vm2140_vm3, %v2075_v35, %v2178_v26  ;;  %v490_v39 = vunpack.c.l.bf16 %v4752_v55  ;;  %v506_v48 = vunpack.c.l.bf16 %v4755_v63  ;;  %v522_v32 = vunpack.c.l.bf16 %v4758_v8 }
 0x104   : > { %v2180_v12 = vsel %vm2142_vm4, %v2091_v5, %v2179_v40  ;;  %v538_v33 = vunpack.c.l.bf16 %v4764_v60  ;;  %v554_v20 = vunpack.c.l.bf16 %v4767_v15  ;;  %v570_v47 = vunpack.c.l.bf16 %v4770_v50 }
 0x105   : > { %v2181_v3 = vsel %vm2144_vm5, %v2107_v42, %v2180_v12  ;;  %v586_v38 = vunpack.c.l.bf16 %v4777_v6  ;;  %v650_v37 = vadd.f32 %v362_v51, %v346_v36  ;;  %v762_v56 = vadd.f32 %v394_v22, %v378_v13 }
 0x106   : > { %v2182_v44 = vsel %vm2146_vm6, %v2123_v46, %v2181_v3  ;;  %v874_v4 = vadd.f32 %v426_v23, %v410_v45  ;;  %v986_v54 = vadd.f32 %v458_v41, %v442_v14  ;;  %v1098_v24 = vadd.f32 %v490_v39, %v474_v9 }
 0x107   : > { %v2258_v30 = vpack.c.b16 %v2182_v44, %v2182_v44  ;;  %v651_v25 = vrot.slane %v650_v37, 4  ;;  %v763_v27 = vrot.slane %v762_v56, 4  ;;  %v1210_v53 = vadd.f32 %v522_v32, %v506_v48 }
 0x108   : > { %v875_v0 = vrot.slane %v874_v4, 4  ;;  %v987_v61 = vrot.slane %v986_v54, 4  ;;  %v1099_v1 = vrot.slane %v1098_v24, 4  ;;  %v1322_v2 = vadd.f32 %v554_v20, %v538_v33 }
 0x109   : > { %3126 = vmatmul.bf16.vlgmr.msrb.gmra.mxu1 %v2258_v30  ;;  %v652_v62 = vadd.f32 %v651_v25, %v650_v37  ;;  %v764_v10 = vadd.f32 %v763_v27, %v762_v56  ;;  %v1211_v21 = vrot.slane %v1210_v53, 4  ;;  %v1434_v29 = vadd.f32 %v586_v38, %v570_v47 }
 0x10a   : > { %3222 = vmatpush.bf16.msrb.mxu1 %v3999_v34  ;;  %v876_v11 = vadd.f32 %v875_v0, %v874_v4  ;;  %v988_v52 = vadd.f32 %v987_v61, %v986_v54  ;;  %v1100_v16 = vadd.f32 %v1099_v1, %v1098_v24  ;;  %v1323_v35 = vrot.slane %v1322_v2, 4 }
 0x10b   : > { %v653_v5 = vrot.slane %v652_v62, 2  ;;  %v765_v42 = vrot.slane %v764_v10, 2  ;;  %v1212_v36 = vadd.f32 %v1211_v21, %v1210_v53  ;;  %v1435_v46 = vrot.slane %v1434_v29, 4 }
 0x10c   : > { %v877_v57 = vrot.slane %v876_v11, 2  ;;  %v989_v51 = vrot.slane %v988_v52, 2  ;;  %v1101_v13 = vrot.slane %v1100_v16, 2  ;;  %v1324_v58 = vadd.f32 %v1323_v35, %v1322_v2 }
 0x10d   : > { %v654_v22 = vadd.f32 %v653_v5, %v652_v62  ;;  %v766_v45 = vadd.f32 %v765_v42, %v764_v10  ;;  %v1213_v23 = vrot.slane %v1212_v36, 2  ;;  %v1436_v26 = vadd.f32 %v1435_v46, %v1434_v29  ;;  %v4794_v62 = vld [vmem:[%s4335_s25 + $0x28] sm:$0xff] }
 0x10e   : > { %v878_v14 = vadd.f32 %v877_v57, %v876_v11  ;;  %v990_v41 = vadd.f32 %v989_v51, %v988_v52  ;;  %v1102_v9 = vadd.f32 %v1101_v13, %v1100_v16  ;;  %v1325_v40 = vrot.slane %v1324_v58, 2  ;;  %v4797_v52 = vld [vmem:[%s4335_s25 + $0x68] sm:$0xff] }
 0x10f   : > { %v655_v39 = vrot.slane %v654_v22, 1  ;;  %v767_v48 = vrot.slane %v766_v45, 1  ;;  %v1214_v32 = vadd.f32 %v1213_v23, %v1212_v36  ;;  %v1437_v12 = vrot.slane %v1436_v26, 2  ;;  %v4800_v16 = vld [vmem:[%s4335_s25 + $0xa8] sm:$0xff] }
 0x110   : > { %v879_v33 = vrot.slane %v878_v14, 1  ;;  %v991_v20 = vrot.slane %v990_v41, 1  ;;  %v1103_v47 = vrot.slane %v1102_v9, 1  ;;  %v1326_v3 = vadd.f32 %v1325_v40, %v1324_v58  ;;  %v4803_v46 = vld [vmem:[%s4335_s25 + $0xe8] sm:$0xff] }
 0x111   : > { %v656_v38 = vadd.f32 %v655_v39, %v654_v22  ;;  %v768_v37 = vadd.f32 %v767_v48, %v766_v45  ;;  %v1215_v56 = vrot.slane %v1214_v32, 1  ;;  %v1438_v44 = vadd.f32 %v1437_v12, %v1436_v26  ;;  %v4806_v57 = vld [vmem:[%s4335_s25 + $0x128] sm:$0xff] }
 0x112   : > { %v880_v34 = vadd.f32 %v879_v33, %v878_v14  ;;  %v992_v4 = vadd.f32 %v991_v20, %v990_v41  ;;  %v1104_v54 = vadd.f32 %v1103_v47, %v1102_v9  ;;  %v1327_v24 = vrot.slane %v1326_v3, 1  ;;  %v4810_v22 = vld [vmem:[%s4335_s25 + $0x168] sm:$0xff] }
 0x113   : > { %v1216_v30 = vadd.f32 %v1215_v56, %v1214_v32  ;;  %v1439_v25 = vrot.slane %v1438_v44, 1  ;;  %v1498_v27 = vpack.c.bf16 %v656_v38, %v656_v38  ;;  %v1514_v53 = vpack.c.bf16 %v768_v37, %v768_v37  ;;  %v4813_v45 = vld [vmem:[%s4335_s25 + $0x1a8] sm:$0xff] }
 0x114   : > { %v1328_v0 = vadd.f32 %v1327_v24, %v1326_v3  ;;  %v1530_v61 = vpack.c.bf16 %v880_v34, %v880_v34  ;;  %v1546_v1 = vpack.c.bf16 %v992_v4, %v992_v4  ;;  %v1562_v2 = vpack.c.bf16 %v1104_v54, %v1104_v54  ;;  %v4816_v23 = vld [vmem:[%s4335_s25 + $0x1e8] sm:$0xff] }
 0x115   : > { %v1440_v10 = vadd.f32 %v1439_v25, %v1438_v44  ;;  %v1578_v21 = vpack.c.bf16 %v1216_v30, %v1216_v30  ;;  %v2014_v29 = vunpack.c.l.b16 %v1498_v27  ;;  %v2030_v11 = vunpack.c.l.b16 %v1514_v53  ;;  %v4821_v9 = vld [vmem:[%s4335_s25 + $0x228] sm:$0xff] }
 0x116   : > { %v1594_v35 = vpack.c.bf16 %v1328_v0, %v1328_v0  ;;  %v2046_v5 = vunpack.c.l.b16 %v1530_v61  ;;  %v2062_v42 = vunpack.c.l.b16 %v1546_v1  ;;  %v2078_v36 = vunpack.c.l.b16 %v1562_v2  ;;  %v4824_v40 = vld [vmem:[%s4335_s25 + $0x268] sm:$0xff] }
 0x117   : > { %v1610_v51 = vpack.c.bf16 %v1440_v10, %v1440_v10  ;;  %v2094_v13 = vunpack.c.l.b16 %v1578_v21  ;;  %v2197_v58 = vsel %vm2134_vm0, %v2030_v11, %v2014_v29  ;;  %v348_v26 = vunpack.c.l.bf16 %v4794_v62  ;;  %v4827_v39 = vld [vmem:[%s4335_s25 + $0x2a8] sm:$0xff] }
 0x118   : > { %v2110_v14 = vunpack.c.l.b16 %v1594_v35  ;;  %v2198_v41 = vsel %vm2136_vm1, %v2046_v5, %v2197_v58  ;;  %v364_v48 = vunpack.c.l.bf16 %v4797_v52  ;;  %v380_v32 = vunpack.c.l.bf16 %v4800_v16  ;;  %v4833_v20 = vld [vmem:[%s4335_s25 + $0x2e8] sm:$0xff] }
 0x119   : > { %v2126_v12 = vunpack.c.l.b16 %v1610_v51  ;;  %v2199_v33 = vsel %vm2138_vm2, %v2062_v42, %v2198_v41  ;;  %v4836_v47 = vld [vmem:[%s4335_s25 + $0x328] sm:$0xff]  ;;  %v396_v38 = vunpack.c.l.bf16 %v4803_v46  ;;  %v412_v37 = vunpack.c.l.bf16 %v4806_v57 }
 0x11a   : > { %5197 = vst [vmem:[#allocation15_spill] sm:$0xff] %v4836_v47  ;;  %v4839_v3 = vld [vmem:[%s4335_s25 + $0x368] sm:$0xff]  ;;  %v2200_v56 = vsel %vm2140_vm3, %v2078_v36, %v2199_v33  ;;  %v428_v4 = vunpack.c.l.bf16 %v4810_v22  ;;  %v444_v54 = vunpack.c.l.bf16 %v4813_v45  ;;  %v460_v24 = vunpack.c.l.bf16 %v4816_v23 }
 0x11b   : > { %5198 = vst [vmem:[#allocation11_spill] sm:$0xff] %v4839_v3  ;;  %v4845_v44 = vld [vmem:[%s4335_s25 + $0x3a8] sm:$0xff]  ;;  %v2201_v30 = vsel %vm2142_vm4, %v2094_v13, %v2200_v56  ;;  %v476_v25 = vunpack.c.l.bf16 %v4821_v9  ;;  %v492_v27 = vunpack.c.l.bf16 %v4824_v40  ;;  %v508_v53 = vunpack.c.l.bf16 %v4827_v39 }
 0x11c   : > { %5199 = vst [vmem:[#allocation12_spill] sm:$0xff] %v4845_v44  ;;  %v4848_v34 = vld [vmem:[%s4335_s25 + $0x3e8] sm:$0xff]  ;;  %v2202_v0 = vsel %vm2144_vm5, %v2110_v14, %v2201_v30  ;;  %v524_v61 = vunpack.c.l.bf16 %v4833_v20  ;;  %v540_v1 = vunpack.c.l.bf16 %v4836_v47  ;;  %v556_v2 = vunpack.c.l.bf16 %v4839_v3 }
 0x11d   : > { %5200 = vst [vmem:[#allocation13_spill] sm:$0xff] %v4848_v34  ;;  %v2203_v10 = vsel %vm2146_vm6, %v2126_v12, %v2202_v0  ;;  %v572_v21 = vunpack.c.l.bf16 %v4845_v44  ;;  %v588_v29 = vunpack.c.l.bf16 %v4848_v34  ;;  %v664_v11 = vadd.f32 %v364_v48, %v348_v26 }
 0x11e   : > { %v2261_v35 = vpack.c.b16 %v2203_v10, %v2203_v10  ;;  %v776_v5 = vadd.f32 %v396_v38, %v380_v32  ;;  %v888_v42 = vadd.f32 %v428_v4, %v412_v37  ;;  %v1000_v36 = vadd.f32 %v460_v24, %v444_v54 }
 0x11f   : > { %v665_v51 = vrot.slane %v664_v11, 4  ;;  %v1112_v13 = vadd.f32 %v492_v27, %v476_v25  ;;  %v1224_v58 = vadd.f32 %v524_v61, %v508_v53  ;;  %v1336_v14 = vadd.f32 %v556_v2, %v540_v1 }
 0x120   : > { %3165 = vmatmul.bf16.vlgmr.msra.gmra.mxu0 %v2261_v35  ;;  %v777_v41 = vrot.slane %v776_v5, 4  ;;  %v889_v33 = vrot.slane %v888_v42, 4  ;;  %v1001_v56 = vrot.slane %v1000_v36, 4  ;;  %v1448_v30 = vadd.f32 %v588_v29, %v572_v21 }
 0x121   : > { %v666_v3 = vadd.f32 %v665_v51, %v664_v11  ;;  %v1113_v12 = vrot.slane %v1112_v13, 4  ;;  %v1225_v0 = vrot.slane %v1224_v58, 4  ;;  %v1337_v44 = vrot.slane %v1336_v14, 4 }
 0x122   : > { %v778_v47 = vadd.f32 %v777_v41, %v776_v5  ;;  %v890_v34 = vadd.f32 %v889_v33, %v888_v42  ;;  %v1002_v26 = vadd.f32 %v1001_v56, %v1000_v36  ;;  %v1449_v48 = vrot.slane %v1448_v30, 4 }
 0x123   : > { %v667_v32 = vrot.slane %v666_v3, 2  ;;  %v1114_v38 = vadd.f32 %v1113_v12, %v1112_v13  ;;  %v1226_v37 = vadd.f32 %v1225_v0, %v1224_v58  ;;  %v1338_v4 = vadd.f32 %v1337_v44, %v1336_v14 }
 0x124   : > { %v779_v54 = vrot.slane %v778_v47, 2  ;;  %v891_v24 = vrot.slane %v890_v34, 2  ;;  %v1003_v25 = vrot.slane %v1002_v26, 2  ;;  %v1450_v27 = vadd.f32 %v1449_v48, %v1448_v30 }
 0x125   : > { %v668_v53 = vadd.f32 %v667_v32, %v666_v3  ;;  %v1115_v61 = vrot.slane %v1114_v38, 2  ;;  %v1227_v1 = vrot.slane %v1226_v37, 2  ;;  %v1339_v2 = vrot.slane %v1338_v4, 2 }
 0x126   : > { %v780_v10 = vadd.f32 %v779_v54, %v778_v47  ;;  %v892_v21 = vadd.f32 %v891_v24, %v890_v34  ;;  %v1004_v29 = vadd.f32 %v1003_v25, %v1002_v26  ;;  %v1451_v11 = vrot.slane %v1450_v27, 2 }
 0x127   : > { %v669_v35 = vrot.slane %v668_v53, 1  ;;  %v1116_v5 = vadd.f32 %v1115_v61, %v1114_v38  ;;  %v1228_v42 = vadd.f32 %v1227_v1, %v1226_v37  ;;  %v1340_v36 = vadd.f32 %v1339_v2, %v1338_v4 }
 0x128   : > { %v781_v51 = vrot.slane %v780_v10, 1  ;;  %v893_v13 = vrot.slane %v892_v21, 1  ;;  %v1005_v58 = vrot.slane %v1004_v29, 1  ;;  %v1452_v44 = vadd.f32 %v1451_v11, %v1450_v27 }
 0x129   : > { %v670_v14 = vadd.f32 %v669_v35, %v668_v53  ;;  %v1117_v41 = vrot.slane %v1116_v5, 1  ;;  %v1229_v33 = vrot.slane %v1228_v42, 1  ;;  %v1341_v56 = vrot.slane %v1340_v36, 1 }
 0x12a   : > { %v782_v3 = vadd.f32 %v781_v51, %v780_v10  ;;  %v894_v30 = vadd.f32 %v893_v13, %v892_v21  ;;  %v1006_v12 = vadd.f32 %v1005_v58, %v1004_v29  ;;  %v1453_v0 = vrot.slane %v1452_v44, 1 }
 0x12b   : > { %v1118_v47 = vadd.f32 %v1117_v41, %v1116_v5  ;;  %v1230_v34 = vadd.f32 %v1229_v33, %v1228_v42  ;;  %v1342_v26 = vadd.f32 %v1341_v56, %v1340_v36  ;;  %v1500_v48 = vpack.c.bf16 %v670_v14, %v670_v14 }
 0x12c   : > { %v1454_v32 = vadd.f32 %v1453_v0, %v1452_v44  ;;  %v1516_v38 = vpack.c.bf16 %v782_v3, %v782_v3  ;;  %v1532_v37 = vpack.c.bf16 %v894_v30, %v894_v30  ;;  %v1548_v4 = vpack.c.bf16 %v1006_v12, %v1006_v12 }
 0x12d   : > { %v1564_v54 = vpack.c.bf16 %v1118_v47, %v1118_v47  ;;  %v1580_v24 = vpack.c.bf16 %v1230_v34, %v1230_v34  ;;  %v1596_v25 = vpack.c.bf16 %v1342_v26, %v1342_v26  ;;  %v2016_v27 = vunpack.c.l.b16 %v1500_v48 }
 0x12e   : > { %v1612_v53 = vpack.c.bf16 %v1454_v32, %v1454_v32  ;;  %v2032_v61 = vunpack.c.l.b16 %v1516_v38  ;;  %v2048_v1 = vunpack.c.l.b16 %v1532_v37  ;;  %v2064_v2 = vunpack.c.l.b16 %v1548_v4 }
 0x12f   : > { %v2080_v10 = vunpack.c.l.b16 %v1564_v54  ;;  %v2096_v21 = vunpack.c.l.b16 %v1580_v24  ;;  %v2112_v29 = vunpack.c.l.b16 %v1596_v25  ;;  %v347_v11 = vunpack.c.h.bf16 %v4723_v59 }
 0x130   : > { %v2128_v35 = vunpack.c.l.b16 %v1612_v53  ;;  %v2211_v5 = vsel %vm2134_vm0, %v2032_v61, %v2016_v27  ;;  %v363_v42 = vunpack.c.h.bf16 %v4726_v31  ;;  %v379_v36 = vunpack.c.h.bf16 %v4729_v28 }
 0x131   : > { %v2212_v51 = vsel %vm2136_vm1, %v2048_v1, %v2211_v5  ;;  %v395_v13 = vunpack.c.h.bf16 %v4732_v7  ;;  %v411_v58 = vunpack.c.h.bf16 %v4735_v18  ;;  %v427_v44 = vunpack.c.h.bf16 %v4738_v17 }
 0x132   : > { %v2213_v14 = vsel %vm2138_vm2, %v2064_v2, %v2212_v51  ;;  %v443_v41 = vunpack.c.h.bf16 %v4741_v43  ;;  %v459_v59 = vunpack.c.h.bf16 %v4744_v19  ;;  %v475_v33 = vunpack.c.h.bf16 %v4747_v49 }
 0x133   : > { %v2214_v31 = vsel %vm2140_vm3, %v2080_v10, %v2213_v14  ;;  %v491_v28 = vunpack.c.h.bf16 %v4752_v55  ;;  %v507_v56 = vunpack.c.h.bf16 %v4755_v63  ;;  %v523_v7 = vunpack.c.h.bf16 %v4758_v8 }
 0x134   : > { %v2215_v18 = vsel %vm2142_vm4, %v2096_v21, %v2214_v31  ;;  %v539_v17 = vunpack.c.h.bf16 %v4764_v60  ;;  %v555_v3 = vunpack.c.h.bf16 %v4767_v15  ;;  %v571_v43 = vunpack.c.h.bf16 %v4770_v50 }
 0x135   : > { %v2216_v19 = vsel %vm2144_vm5, %v2112_v29, %v2215_v18  ;;  %v587_v49 = vunpack.c.h.bf16 %v4777_v6  ;;  %v657_v30 = vadd.f32 %v363_v42, %v347_v11  ;;  %v769_v12 = vadd.f32 %v395_v13, %v379_v36 }
 0x136   : > { %v2217_v55 = vsel %vm2146_vm6, %v2128_v35, %v2216_v19  ;;  %v881_v0 = vadd.f32 %v427_v44, %v411_v58  ;;  %v993_v63 = vadd.f32 %v459_v59, %v443_v41  ;;  %v1105_v47 = vadd.f32 %v491_v28, %v475_v33 }
 0x137   : > { %v2263_v8 = vpack.c.b16 %v2217_v55, %v2217_v55  ;;  %v658_v34 = vrot.slane %v657_v30, 4  ;;  %v770_v26 = vrot.slane %v769_v12, 4  ;;  %v1217_v48 = vadd.f32 %v523_v7, %v507_v56 }
 0x138   : > { %v882_v60 = vrot.slane %v881_v0, 4  ;;  %v994_v32 = vrot.slane %v993_v63, 4  ;;  %v1106_v15 = vrot.slane %v1105_v47, 4  ;;  %v1329_v38 = vadd.f32 %v555_v3, %v539_v17 }
 0x139   : > { %3191 = vmatmul.bf16.vlgmr.msra.gmra.mxu2 %v2263_v8  ;;  %v659_v50 = vadd.f32 %v658_v34, %v657_v30  ;;  %v771_v37 = vadd.f32 %v770_v26, %v769_v12  ;;  %v1218_v4 = vrot.slane %v1217_v48, 4  ;;  %v1441_v6 = vadd.f32 %v587_v49, %v571_v43 }
 0x13a   : > { %v883_v54 = vadd.f32 %v882_v60, %v881_v0  ;;  %v995_v24 = vadd.f32 %v994_v32, %v993_v63  ;;  %v1107_v25 = vadd.f32 %v1106_v15, %v1105_v47  ;;  %v1330_v27 = vrot.slane %v1329_v38, 4 }
 0x13b   : > { %v660_v53 = vrot.slane %v659_v50, 2  ;;  %v772_v61 = vrot.slane %v771_v37, 2  ;;  %v1219_v1 = vadd.f32 %v1218_v4, %v1217_v48  ;;  %v1442_v2 = vrot.slane %v1441_v6, 4 }
 0x13c   : > { %v884_v10 = vrot.slane %v883_v54, 2  ;;  %v996_v21 = vrot.slane %v995_v24, 2  ;;  %v1108_v29 = vrot.slane %v1107_v25, 2  ;;  %v1331_v11 = vadd.f32 %v1330_v27, %v1329_v38 }
 0x13d   : > { %v661_v35 = vadd.f32 %v660_v53, %v659_v50  ;;  %v773_v5 = vadd.f32 %v772_v61, %v771_v37  ;;  %v1220_v42 = vrot.slane %v1219_v1, 2  ;;  %v1443_v36 = vadd.f32 %v1442_v2, %v1441_v6  ;;  %v3990_v53 = vld [vmem:[#allocation5 + $0x330] sm:$0xff] }
 0x13e   : > { %v885_v51 = vadd.f32 %v884_v10, %v883_v54  ;;  %v997_v13 = vadd.f32 %v996_v21, %v995_v24  ;;  %v1109_v58 = vadd.f32 %v1108_v29, %v1107_v25  ;;  %v1332_v44 = vrot.slane %v1331_v11, 2  ;;  %v3998_v61 = vld [vmem:[#allocation5 + $0x370] sm:$0xff]  ;;  %3210 = vmatpush.bf16.msrb.mxu0 %v3990_v53 }
 0x13f   : > { %v662_v14 = vrot.slane %v661_v35, 1  ;;  %v774_v41 = vrot.slane %v773_v5, 1  ;;  %v1221_v59 = vadd.f32 %v1220_v42, %v1219_v1  ;;  %v1444_v33 = vrot.slane %v1443_v36, 2  ;;  %v4006_v1 = vld [vmem:[#allocation5 + $0x3b0] sm:$0xff]  ;;  %3223 = vmatpush.bf16.msrb.mxu1 %v3998_v61 }
 0x140   : > { %v886_v31 = vrot.slane %v885_v51, 1  ;;  %v998_v28 = vrot.slane %v997_v13, 1  ;;  %v1110_v56 = vrot.slane %v1109_v58, 1  ;;  %v1333_v7 = vadd.f32 %v1332_v44, %v1331_v11  ;;  %v4014_v11 = vld [vmem:[#allocation5 + $0x3f0] sm:$0xff]  ;;  %3236 = vmatpush.bf16.msrb.mxu2 %v4006_v1  ;;  %v4005_v44 = vld [vmem:[#allocation5 + $0x3a8] sm:$0xff] }
 0x141   : > { %v663_v18 = vadd.f32 %v662_v14, %v661_v35  ;;  %v775_v17 = vadd.f32 %v774_v41, %v773_v5  ;;  %v1222_v3 = vrot.slane %v1221_v59, 1  ;;  %v1445_v43 = vadd.f32 %v1444_v33, %v1443_v36  ;;  %3249 = vmatpush.bf16.msrb.mxu3 %v4014_v11 }
 0x142   : > { %v887_v19 = vadd.f32 %v886_v31, %v885_v51  ;;  %v999_v49 = vadd.f32 %v998_v28, %v997_v13  ;;  %v1111_v30 = vadd.f32 %v1110_v56, %v1109_v58  ;;  %v1334_v12 = vrot.slane %v1333_v7, 1  ;;  %v3997_v51 = vld [vmem:[#allocation5 + $0x368] sm:$0xff]  ;;  %v5201_v31 = vld [vmem:[#allocation15_spill] sm:$0xff] }
 0x143   : > { %v1223_v55 = vadd.f32 %v1222_v3, %v1221_v59  ;;  %v1446_v0 = vrot.slane %v1445_v43, 1  ;;  %v1499_v63 = vpack.c.bf16 %v663_v18, %v663_v18  ;;  %v1515_v47 = vpack.c.bf16 %v775_v17, %v775_v17  ;;  %v4013_v59 = vld [vmem:[#allocation5 + $0x3e8] sm:$0xff]  ;;  %v5202_v28 = vld [vmem:[#allocation11_spill] sm:$0xff]  ;;  %v5204_v17 = vld [vmem:[#allocation13_spill] sm:$0xff]  ;;  %3224 = vmatpush.bf16.msrb.mxu1 %v3997_v51 }
 0x144   : > { %v1335_v8 = vadd.f32 %v1334_v12, %v1333_v7  ;;  %v1531_v34 = vpack.c.bf16 %v887_v19, %v887_v19  ;;  %v1547_v26 = vpack.c.bf16 %v999_v49, %v999_v49  ;;  %v1563_v48 = vpack.c.bf16 %v1111_v30, %v1111_v30  ;;  %v5203_v7 = vld [vmem:[#allocation12_spill] sm:$0xff]  ;;  %3237 = vmatpush.bf16.msrb.mxu2 %v4005_v44  ;;  %v3994_v51 = vld [vmem:[#allocation5 + $0x350] sm:$0xff] }
 0x145   : > { %v1447_v60 = vadd.f32 %v1446_v0, %v1445_v43  ;;  %v1579_v32 = vpack.c.bf16 %v1223_v55, %v1223_v55  ;;  %v2015_v15 = vunpack.c.l.b16 %v1499_v63  ;;  %v2031_v38 = vunpack.c.l.b16 %v1515_v47  ;;  %3250 = vmatpush.bf16.msrb.mxu3 %v4013_v59  ;;  %v4012_v47 = vld [vmem:[#allocation5 + $0x3e0] sm:$0xff]  ;;  %v4002_v44 = vld [vmem:[#allocation5 + $0x390] sm:$0xff] }
 0x146   : > { %v1595_v50 = vpack.c.bf16 %v1335_v8, %v1335_v8  ;;  %v2047_v37 = vunpack.c.l.b16 %v1531_v34  ;;  %v2063_v4 = vunpack.c.l.b16 %v1547_v26  ;;  %v2079_v6 = vunpack.c.l.b16 %v1563_v48  ;;  %v4010_v59 = vld [vmem:[#allocation5 + $0x3d0] sm:$0xff] }
 0x147   : > { %v1611_v54 = vpack.c.bf16 %v1447_v60, %v1447_v60  ;;  %v2095_v24 = vunpack.c.l.b16 %v1579_v32  ;;  %v2204_v25 = vsel %vm2134_vm0, %v2031_v38, %v2015_v15  ;;  %v349_v27 = vunpack.c.h.bf16 %v4794_v62  ;;  %v3989_v62 = vld [vmem:[#allocation5 + $0x328] sm:$0xff] }
 0x148   : > { %v2111_v2 = vunpack.c.l.b16 %v1595_v50  ;;  %v2205_v10 = vsel %vm2136_vm1, %v2047_v37, %v2204_v25  ;;  %v365_v21 = vunpack.c.h.bf16 %v4797_v52  ;;  %v381_v29 = vunpack.c.h.bf16 %v4800_v16  ;;  %3211 = vmatpush.bf16.msrb.mxu0 %v3989_v62  ;;  %v3987_v50 = vld [vmem:[#allocation5 + $0x318] sm:$0xff]  ;;  %v3986_v62 = vld [vmem:[#allocation5 + $0x310] sm:$0xff] }
 0x149   : > { %v2127_v35 = vunpack.c.l.b16 %v1611_v54  ;;  %v2206_v5 = vsel %vm2138_vm2, %v2063_v4, %v2205_v10  ;;  %v397_v42 = vunpack.c.h.bf16 %v4803_v46  ;;  %v413_v36 = vunpack.c.h.bf16 %v4806_v57  ;;  %v3995_v37 = vld [vmem:[#allocation5 + $0x358] sm:$0xff]  ;;  %3251 = vmatpush.bf16.msrb.mxu3 %v4012_v47 }
 0x14a   : > { %v2207_v13 = vsel %vm2140_vm3, %v2079_v6, %v2206_v5  ;;  %v429_v58 = vunpack.c.h.bf16 %v4810_v22  ;;  %v445_v52 = vunpack.c.h.bf16 %v4813_v45  ;;  %v461_v16 = vunpack.c.h.bf16 %v4816_v23  ;;  %v4003_v25 = vld [vmem:[#allocation5 + $0x398] sm:$0xff] }
 0x14b   : > { %v2208_v14 = vsel %vm2142_vm4, %v2095_v24, %v2207_v13  ;;  %v477_v46 = vunpack.c.h.bf16 %v4821_v9  ;;  %v493_v57 = vunpack.c.h.bf16 %v4824_v40  ;;  %v509_v41 = vunpack.c.h.bf16 %v4827_v39  ;;  %v3988_v40 = vld [vmem:[#allocation5 + $0x320] sm:$0xff] }
 0x14c   : > { %v2209_v33 = vsel %vm2144_vm5, %v2111_v2, %v2208_v14  ;;  %v525_v22 = vunpack.c.h.bf16 %v4833_v20  ;;  %v541_v45 = vunpack.c.h.bf16 %v5201_v31  ;;  %v557_v23 = vunpack.c.h.bf16 %v5202_v28  ;;  %v3996_v39 = vld [vmem:[#allocation5 + $0x360] sm:$0xff]  ;;  %3212 = vmatpush.bf16.msrb.mxu0 %v3988_v40  ;;  %v4011_v2 = vld [vmem:[#allocation5 + $0x3d8] sm:$0xff] }
 0x14d   : > { %v2210_v56 = vsel %vm2146_vm6, %v2127_v35, %v2209_v33  ;;  %v573_v18 = vunpack.c.h.bf16 %v5203_v7  ;;  %v589_v3 = vunpack.c.h.bf16 %v5204_v17  ;;  %v671_v9 = vadd.f32 %v365_v21, %v349_v27  ;;  %v4004_v20 = vld [vmem:[#allocation5 + $0x3a0] sm:$0xff]  ;;  %3225 = vmatpush.bf16.msrb.mxu1 %v3996_v39  ;;  %3252 = vmatpush.bf16.msrb.mxu3 %v4011_v2  ;;  %v3993_v17 = vld [vmem:[#allocation5 + $0x348] sm:$0xff] }
 0x14e   : > { %v2262_v43 = vpack.c.b16 %v2210_v56, %v2210_v56  ;;  %v783_v19 = vadd.f32 %v397_v42, %v381_v29  ;;  %v895_v49 = vadd.f32 %v429_v58, %v413_v36  ;;  %v1007_v30 = vadd.f32 %v461_v16, %v445_v52  ;;  %3238 = vmatpush.bf16.msrb.mxu2 %v4004_v20 }
 0x14f   : > { %v672_v12 = vrot.slane %v671_v9, 4  ;;  %v1119_v55 = vadd.f32 %v493_v57, %v477_v46  ;;  %v1231_v0 = vadd.f32 %v525_v22, %v509_v41  ;;  %v1343_v63 = vadd.f32 %v557_v23, %v541_v45 }
 0x150   : > { %3178 = vmatmul.bf16.vlgmr.msra.gmra.mxu1 %v2262_v43  ;;  %v784_v8 = vrot.slane %v783_v19, 4  ;;  %v896_v34 = vrot.slane %v895_v49, 4  ;;  %v1008_v26 = vrot.slane %v1007_v30, 4  ;;  %v1455_v48 = vadd.f32 %v589_v3, %v573_v18  ;;  %3213 = vmatpush.bf16.msrb.mxu0 %v3987_v50  ;;  %v3985_v18 = vld [vmem:[#allocation5 + $0x308] sm:$0xff]  ;;  %v3984_v50 = vld [vmem:[#allocation5 + $0x300] sm:$0xff] }
 0x151   : > { %v673_v60 = vadd.f32 %v672_v12, %v671_v9  ;;  %v1120_v32 = vrot.slane %v1119_v55, 4  ;;  %v1232_v15 = vrot.slane %v1231_v0, 4  ;;  %v1344_v38 = vrot.slane %v1343_v63, 4  ;;  %3226 = vmatpush.bf16.msrb.mxu1 %v3995_v37  ;;  %v4001_v43 = vld [vmem:[#allocation5 + $0x388] sm:$0xff]  ;;  %3253 = vmatpush.bf16.msrb.mxu3 %v4010_v59  ;;  %v3992_v37 = vld [vmem:[#allocation5 + $0x340] sm:$0xff] }
 0x152   : > { %v785_v4 = vadd.f32 %v784_v8, %v783_v19  ;;  %v897_v6 = vadd.f32 %v896_v34, %v895_v49  ;;  %v1009_v54 = vadd.f32 %v1008_v26, %v1007_v30  ;;  %v1456_v24 = vrot.slane %v1455_v48, 4  ;;  %3239 = vmatpush.bf16.msrb.mxu2 %v4003_v25  ;;  %v4009_v12 = vld [vmem:[#allocation5 + $0x3c8] sm:$0xff]  ;;  %v4914_v34 = vld [vmem:[%s4335_s25 + $0x70] sm:$0xff] }
 0x153   : > { %v674_v27 = vrot.slane %v673_v60, 2  ;;  %v1121_v53 = vadd.f32 %v1120_v32, %v1119_v55  ;;  %v1233_v61 = vadd.f32 %v1232_v15, %v1231_v0  ;;  %v1345_v1 = vadd.f32 %v1344_v38, %v1343_v63  ;;  %v4911_v55 = vld [vmem:[%s4335_s25 + $0x30] sm:$0xff] }
 0x154   : > { %v786_v10 = vrot.slane %v785_v4, 2  ;;  %v898_v21 = vrot.slane %v897_v6, 2  ;;  %v1010_v29 = vrot.slane %v1009_v54, 2  ;;  %v1457_v11 = vadd.f32 %v1456_v24, %v1455_v48  ;;  %3214 = vmatpush.bf16.msrb.mxu0 %v3986_v62  ;;  %v4917_v26 = vld [vmem:[%s4335_s25 + $0xb0] sm:$0xff] }
 0x155   : > { %v675_v35 = vadd.f32 %v674_v27, %v673_v60  ;;  %v1122_v5 = vrot.slane %v1121_v53, 2  ;;  %v1234_v42 = vrot.slane %v1233_v61, 2  ;;  %v1346_v36 = vrot.slane %v1345_v1, 2  ;;  %3227 = vmatpush.bf16.msrb.mxu1 %v3994_v51  ;;  %v4920_v48 = vld [vmem:[%s4335_s25 + $0xf0] sm:$0xff]  ;;  %v4000_v27 = vld [vmem:[#allocation5 + $0x380] sm:$0xff]  ;;  %3254 = vmatpush.bf16.msrb.mxu3 %v4009_v12 }
 0x156   : > { %v787_v13 = vadd.f32 %v786_v10, %v785_v4  ;;  %v899_v58 = vadd.f32 %v898_v21, %v897_v6  ;;  %v1011_v52 = vadd.f32 %v1010_v29, %v1009_v54  ;;  %v1458_v16 = vrot.slane %v1457_v11, 2  ;;  %3240 = vmatpush.bf16.msrb.mxu2 %v4002_v44  ;;  %v4923_v4 = vld [vmem:[%s4335_s25 + $0x130] sm:$0xff] }
 0x157   : > { %v676_v14 = vrot.slane %v675_v35, 1  ;;  %v1123_v46 = vadd.f32 %v1122_v5, %v1121_v53  ;;  %v1235_v57 = vadd.f32 %v1234_v42, %v1233_v61  ;;  %v1347_v41 = vadd.f32 %v1346_v36, %v1345_v1  ;;  %v4008_v53 = vld [vmem:[#allocation5 + $0x3c0] sm:$0xff]  ;;  %v4926_v61 = vld [vmem:[%s4335_s25 + $0x170] sm:$0xff] }
 0x158   : > { %v788_v33 = vrot.slane %v787_v13, 1  ;;  %v900_v22 = vrot.slane %v899_v58, 1  ;;  %v1012_v31 = vrot.slane %v1011_v52, 1  ;;  %v1459_v45 = vadd.f32 %v1458_v16, %v1457_v11  ;;  %3215 = vmatpush.bf16.msrb.mxu0 %v3985_v18  ;;  %v4929_v21 = vld [vmem:[%s4335_s25 + $0x1b0] sm:$0xff] }
 0x159   : > { %v677_v28 = vadd.f32 %v676_v14, %v675_v35  ;;  %v1124_v23 = vrot.slane %v1123_v46, 1  ;;  %v1236_v56 = vrot.slane %v1235_v57, 1  ;;  %v1348_v7 = vrot.slane %v1347_v41, 1  ;;  %3228 = vmatpush.bf16.msrb.mxu1 %v3993_v17  ;;  %v4932_v29 = vld [vmem:[%s4335_s25 + $0x1f0] sm:$0xff]  ;;  %3255 = vmatpush.bf16.msrb.mxu3 %v4008_v53 }
 0x15a   : > { %v789_v3 = vadd.f32 %v788_v33, %v787_v13  ;;  %v901_v9 = vadd.f32 %v900_v22, %v899_v58  ;;  %v1013_v40 = vadd.f32 %v1012_v31, %v1011_v52  ;;  %v1460_v39 = vrot.slane %v1459_v45, 1  ;;  %3241 = vmatpush.bf16.msrb.mxu2 %v4001_v43  ;;  %v4935_v11 = vld [vmem:[%s4335_s25 + $0x230] sm:$0xff] }
 0x15b   : > { %v1125_v19 = vadd.f32 %v1124_v23, %v1123_v46  ;;  %v1237_v49 = vadd.f32 %v1236_v56, %v1235_v57  ;;  %v1349_v30 = vadd.f32 %v1348_v7, %v1347_v41  ;;  %v1501_v20 = vpack.c.bf16 %v677_v28, %v677_v28  ;;  %v4940_v36 = vld [vmem:[%s4335_s25 + $0x270] sm:$0xff] }
 0x15c   : > { %v1461_v0 = vadd.f32 %v1460_v39, %v1459_v45  ;;  %v1517_v63 = vpack.c.bf16 %v789_v3, %v789_v3  ;;  %v1533_v47 = vpack.c.bf16 %v901_v9, %v901_v9  ;;  %v1549_v8 = vpack.c.bf16 %v1013_v40, %v1013_v40  ;;  %v4943_v62 = vld [vmem:[%s4335_s25 + $0x2b0] sm:$0xff]  ;;  %3216 = vmatpush.bf16.msrb.mxu0 %v3984_v50 }
 0x15d   : > { %v1565_v60 = vpack.c.bf16 %v1125_v19, %v1125_v19  ;;  %v1581_v32 = vpack.c.bf16 %v1237_v49, %v1237_v49  ;;  %v1597_v15 = vpack.c.bf16 %v1349_v30, %v1349_v30  ;;  %v2017_v38 = vunpack.c.l.b16 %v1501_v20  ;;  %v4946_v51 = vld [vmem:[%s4335_s25 + $0x2f0] sm:$0xff]  ;;  %3229 = vmatpush.bf16.msrb.mxu1 %v3992_v37 }
 0x15e   : > { %v1613_v6 = vpack.c.bf16 %v1461_v0, %v1461_v0  ;;  %v2033_v54 = vunpack.c.l.b16 %v1517_v63  ;;  %v2049_v24 = vunpack.c.l.b16 %v1533_v47  ;;  %v2065_v25 = vunpack.c.l.b16 %v1549_v8  ;;  %v4952_v16 = vld [vmem:[%s4335_s25 + $0x330] sm:$0xff]  ;;  %3242 = vmatpush.bf16.msrb.mxu2 %v4000_v27 }
 0x15f   : > { %v2081_v1 = vunpack.c.l.b16 %v1565_v60  ;;  %v2097_v2 = vunpack.c.l.b16 %v1581_v32  ;;  %v2113_v10 = vunpack.c.l.b16 %v1597_v15  ;;  %v350_v35 = vunpack.c.l.bf16 %v4911_v55  ;;  %v4955_v44 = vld [vmem:[%s4335_s25 + $0x370] sm:$0xff] }
 0x160   : > { %v2129_v5 = vunpack.c.l.b16 %v1613_v6  ;;  %v2218_v42 = vsel %vm2134_vm0, %v2033_v54, %v2017_v38  ;;  %v366_v13 = vunpack.c.l.bf16 %v4914_v34  ;;  %v382_v58 = vunpack.c.l.bf16 %v4917_v26  ;;  %v4958_v14 = vld [vmem:[%s4335_s25 + $0x3b0] sm:$0xff] }
 0x161   : > { %v2219_v52 = vsel %vm2136_vm1, %v2049_v24, %v2218_v42  ;;  %v398_v46 = vunpack.c.l.bf16 %v4920_v48  ;;  %v414_v57 = vunpack.c.l.bf16 %v4923_v4  ;;  %v430_v41 = vunpack.c.l.bf16 %v4926_v61  ;;  %v4965_v33 = vld [vmem:[%s4335_s25 + $0x3f0] sm:$0xff] }
 0x162   : > { %v2220_v59 = vsel %vm2138_vm2, %v2065_v25, %v2219_v52  ;;  %v446_v22 = vunpack.c.l.bf16 %v4929_v21  ;;  %v462_v31 = vunpack.c.l.bf16 %v4932_v29  ;;  %v478_v45 = vunpack.c.l.bf16 %v4935_v11 }
 0x163   : > { %v2221_v28 = vsel %vm2140_vm3, %v2081_v1, %v2220_v59  ;;  %v494_v23 = vunpack.c.l.bf16 %v4940_v36  ;;  %v510_v56 = vunpack.c.l.bf16 %v4943_v62  ;;  %v526_v7 = vunpack.c.l.bf16 %v4946_v51 }
 0x164   : > { %v2222_v18 = vsel %vm2142_vm4, %v2097_v2, %v2221_v28  ;;  %v542_v17 = vunpack.c.l.bf16 %v4952_v16  ;;  %v558_v3 = vunpack.c.l.bf16 %v4955_v44  ;;  %v574_v9 = vunpack.c.l.bf16 %v4958_v14 }
 0x165   : > { %v2223_v40 = vsel %vm2144_vm5, %v2113_v10, %v2222_v18  ;;  %v590_v39 = vunpack.c.l.bf16 %v4965_v33  ;;  %v678_v43 = vadd.f32 %v366_v13, %v350_v35  ;;  %v790_v19 = vadd.f32 %v398_v46, %v382_v58 }
 0x166   : > { %v2224_v49 = vsel %vm2146_vm6, %v2129_v5, %v2223_v40  ;;  %v902_v30 = vadd.f32 %v430_v41, %v414_v57  ;;  %v1014_v20 = vadd.f32 %v462_v31, %v446_v22  ;;  %v1126_v12 = vadd.f32 %v494_v23, %v478_v45 }
 0x167   : > { %v2264_v0 = vpack.c.b16 %v2224_v49, %v2224_v49  ;;  %v679_v63 = vrot.slane %v678_v43, 4  ;;  %v791_v47 = vrot.slane %v790_v19, 4  ;;  %v1238_v8 = vadd.f32 %v526_v7, %v510_v56 }
 0x168   : > { %v903_v60 = vrot.slane %v902_v30, 4  ;;  %v1015_v32 = vrot.slane %v1014_v20, 4  ;;  %v1127_v15 = vrot.slane %v1126_v12, 4  ;;  %v1350_v38 = vadd.f32 %v558_v3, %v542_v17 }
 0x169   : > { %3204 = vmatmul.bf16.vlgmr.msra.gmra.mxu3 %v2264_v0  ;;  %v680_v50 = vadd.f32 %v679_v63, %v678_v43  ;;  %v792_v37 = vadd.f32 %v791_v47, %v790_v19  ;;  %v1239_v6 = vrot.slane %v1238_v8, 4  ;;  %v1462_v54 = vadd.f32 %v590_v39, %v574_v9 }
 0x16a   : > { %v904_v24 = vadd.f32 %v903_v60, %v902_v30  ;;  %v1016_v25 = vadd.f32 %v1015_v32, %v1014_v20  ;;  %v1128_v27 = vadd.f32 %v1127_v15, %v1126_v12  ;;  %v1351_v53 = vrot.slane %v1350_v38, 4 }
 0x16b   : > { %v681_v1 = vrot.slane %v680_v50, 2  ;;  %v793_v2 = vrot.slane %v792_v37, 2  ;;  %v1240_v10 = vadd.f32 %v1239_v6, %v1238_v8  ;;  %v1463_v35 = vrot.slane %v1462_v54, 4 }
 0x16c   : > { %v905_v5 = vrot.slane %v904_v24, 2  ;;  %v1017_v42 = vrot.slane %v1016_v25, 2  ;;  %v1129_v13 = vrot.slane %v1128_v27, 2  ;;  %v1352_v58 = vadd.f32 %v1351_v53, %v1350_v38 }
 0x16d   : > { %v682_v52 = vadd.f32 %v681_v1, %v680_v50  ;;  %v794_v46 = vadd.f32 %v793_v2, %v792_v37  ;;  %v1241_v57 = vrot.slane %v1240_v10, 2  ;;  %v1464_v41 = vadd.f32 %v1463_v35, %v1462_v54 }
 0x16e   : > { %v906_v59 = vadd.f32 %v905_v5, %v904_v24  ;;  %v1018_v22 = vadd.f32 %v1017_v42, %v1016_v25  ;;  %v1130_v31 = vadd.f32 %v1129_v13, %v1128_v27  ;;  %v1353_v45 = vrot.slane %v1352_v58, 2 }
 0x16f   : > { %v683_v28 = vrot.slane %v682_v52, 1  ;;  %v795_v23 = vrot.slane %v794_v46, 1  ;;  %v1242_v56 = vadd.f32 %v1241_v57, %v1240_v10  ;;  %v1465_v7 = vrot.slane %v1464_v41, 2 }
 0x170   : > { %v907_v18 = vrot.slane %v906_v59, 1  ;;  %v1019_v17 = vrot.slane %v1018_v22, 1  ;;  %v1131_v3 = vrot.slane %v1130_v31, 1  ;;  %v1354_v9 = vadd.f32 %v1353_v45, %v1352_v58 }
 0x171   : > { %v684_v40 = vadd.f32 %v683_v28, %v682_v52  ;;  %v796_v39 = vadd.f32 %v795_v23, %v794_v46  ;;  %v1243_v43 = vrot.slane %v1242_v56, 1  ;;  %v1466_v19 = vadd.f32 %v1465_v7, %v1464_v41 }
 0x172   : > { %v908_v49 = vadd.f32 %v907_v18, %v906_v59  ;;  %v1020_v30 = vadd.f32 %v1019_v17, %v1018_v22  ;;  %v1132_v20 = vadd.f32 %v1131_v3, %v1130_v31  ;;  %v1355_v12 = vrot.slane %v1354_v9, 1 }
 0x173   : > { %v1244_v0 = vadd.f32 %v1243_v43, %v1242_v56  ;;  %v1467_v63 = vrot.slane %v1466_v19, 1  ;;  %v1502_v47 = vpack.c.bf16 %v684_v40, %v684_v40  ;;  %v1518_v8 = vpack.c.bf16 %v796_v39, %v796_v39 }
 0x174   : > { %v1356_v60 = vadd.f32 %v1355_v12, %v1354_v9  ;;  %v1534_v32 = vpack.c.bf16 %v908_v49, %v908_v49  ;;  %v1550_v15 = vpack.c.bf16 %v1020_v30, %v1020_v30  ;;  %v1566_v38 = vpack.c.bf16 %v1132_v20, %v1132_v20 }
 0x175   : > { %v1468_v50 = vadd.f32 %v1467_v63, %v1466_v19  ;;  %v1582_v37 = vpack.c.bf16 %v1244_v0, %v1244_v0  ;;  %v2018_v6 = vunpack.c.l.b16 %v1502_v47  ;;  %v2034_v54 = vunpack.c.l.b16 %v1518_v8 }
 0x176   : > { %v1598_v24 = vpack.c.bf16 %v1356_v60, %v1356_v60  ;;  %v2050_v25 = vunpack.c.l.b16 %v1534_v32  ;;  %v2066_v27 = vunpack.c.l.b16 %v1550_v15  ;;  %v2082_v53 = vunpack.c.l.b16 %v1566_v38 }
 0x177   : > { %v1614_v1 = vpack.c.bf16 %v1468_v50, %v1468_v50  ;;  %v2098_v2 = vunpack.c.l.b16 %v1582_v37  ;;  %v2225_v10 = vsel %vm2134_vm0, %v2034_v54, %v2018_v6  ;;  %v351_v35 = vunpack.c.h.bf16 %v4911_v55 }
 0x178   : > { %v2114_v5 = vunpack.c.l.b16 %v1598_v24  ;;  %v2226_v42 = vsel %vm2136_vm1, %v2050_v25, %v2225_v10  ;;  %v367_v13 = vunpack.c.h.bf16 %v4914_v34  ;;  %v383_v58 = vunpack.c.h.bf16 %v4917_v26 }
 0x179   : > { %v2130_v52 = vunpack.c.l.b16 %v1614_v1  ;;  %v2227_v46 = vsel %vm2138_vm2, %v2066_v27, %v2226_v42  ;;  %v399_v57 = vunpack.c.h.bf16 %v4920_v48  ;;  %v415_v41 = vunpack.c.h.bf16 %v4923_v4 }
 0x17a   : > { %v2228_v59 = vsel %vm2140_vm3, %v2082_v53, %v2227_v46  ;;  %v431_v22 = vunpack.c.h.bf16 %v4926_v61  ;;  %v447_v55 = vunpack.c.h.bf16 %v4929_v21  ;;  %v463_v31 = vunpack.c.h.bf16 %v4932_v29 }
 0x17b   : > { %v2229_v45 = vsel %vm2142_vm4, %v2098_v2, %v2228_v59  ;;  %v479_v34 = vunpack.c.h.bf16 %v4935_v11  ;;  %v495_v26 = vunpack.c.h.bf16 %v4940_v36  ;;  %v511_v28 = vunpack.c.h.bf16 %v4943_v62 }
 0x17c   : > { %v2230_v48 = vsel %vm2144_vm5, %v2114_v5, %v2229_v45  ;;  %v527_v4 = vunpack.c.h.bf16 %v4946_v51  ;;  %v543_v23 = vunpack.c.h.bf16 %v4952_v16  ;;  %v559_v61 = vunpack.c.h.bf16 %v4955_v44 }
 0x17d   : > { %v2231_v21 = vsel %vm2146_vm6, %v2130_v52, %v2230_v48  ;;  %v575_v29 = vunpack.c.h.bf16 %v4958_v14  ;;  %v591_v56 = vunpack.c.h.bf16 %v4965_v33  ;;  %v685_v7 = vadd.f32 %v367_v13, %v351_v35 }
 0x17e   : > { %v2265_v11 = vpack.c.b16 %v2231_v21, %v2231_v21  ;;  %v797_v18 = vadd.f32 %v399_v57, %v383_v58  ;;  %v909_v36 = vadd.f32 %v431_v22, %v415_v41  ;;  %v1021_v17 = vadd.f32 %v463_v31, %v447_v55  ;;  %v5005_v21 = vld [vmem:[%s4335_s25 + $0x38] sm:$0xff] }
 0x17f   : > { %v686_v62 = vrot.slane %v685_v7, 4  ;;  %v1133_v3 = vadd.f32 %v495_v26, %v479_v34  ;;  %v1245_v9 = vadd.f32 %v527_v4, %v511_v28  ;;  %v1357_v40 = vadd.f32 %v559_v61, %v543_v23 }
 0x180   : > { %3217 = vmatmul.bf16.vlgmr.msrb.gmra.mxu0 %v2265_v11  ;;  %v798_v51 = vrot.slane %v797_v18, 4  ;;  %v910_v16 = vrot.slane %v909_v36, 4  ;;  %v1022_v39 = vrot.slane %v1021_v17, 4  ;;  %v1469_v44 = vadd.f32 %v591_v56, %v575_v29 }
 0x181   : > { %v687_v43 = vadd.f32 %v686_v62, %v685_v7  ;;  %v1134_v19 = vrot.slane %v1133_v3, 4  ;;  %v1246_v49 = vrot.slane %v1245_v9, 4  ;;  %v1358_v14 = vrot.slane %v1357_v40, 4 }
 0x182   : > { %v799_v30 = vadd.f32 %v798_v51, %v797_v18  ;;  %v911_v33 = vadd.f32 %v910_v16, %v909_v36  ;;  %v1023_v20 = vadd.f32 %v1022_v39, %v1021_v17  ;;  %v1470_v12 = vrot.slane %v1469_v44, 4  ;;  %v5008_v18 = vld [vmem:[%s4335_s25 + $0x78] sm:$0xff] }
 0x183   : > { %v688_v0 = vrot.slane %v687_v43, 2  ;;  %v1135_v63 = vadd.f32 %v1134_v19, %v1133_v3  ;;  %v1247_v47 = vadd.f32 %v1246_v49, %v1245_v9  ;;  %v1359_v8 = vadd.f32 %v1358_v14, %v1357_v40  ;;  %v5011_v36 = vld [vmem:[%s4335_s25 + $0xb8] sm:$0xff] }
 0x184   : > { %v800_v60 = vrot.slane %v799_v30, 2  ;;  %v912_v32 = vrot.slane %v911_v33, 2  ;;  %v1024_v15 = vrot.slane %v1023_v20, 2  ;;  %v1471_v38 = vadd.f32 %v1470_v12, %v1469_v44  ;;  %v5014_v40 = vld [vmem:[%s4335_s25 + $0xf8] sm:$0xff] }
 0x185   : > { %v689_v50 = vadd.f32 %v688_v0, %v687_v43  ;;  %v1136_v37 = vrot.slane %v1135_v63, 2  ;;  %v1248_v6 = vrot.slane %v1247_v47, 2  ;;  %v1360_v54 = vrot.slane %v1359_v8, 2  ;;  %v5017_v51 = vld [vmem:[%s4335_s25 + $0x138] sm:$0xff] }
 0x186   : > { %v801_v24 = vadd.f32 %v800_v60, %v799_v30  ;;  %v913_v25 = vadd.f32 %v912_v32, %v911_v33  ;;  %v1025_v27 = vadd.f32 %v1024_v15, %v1023_v20  ;;  %v1472_v53 = vrot.slane %v1471_v38, 2  ;;  %v5020_v16 = vld [vmem:[%s4335_s25 + $0x178] sm:$0xff] }
 0x187   : > { %v690_v1 = vrot.slane %v689_v50, 1  ;;  %v1137_v2 = vadd.f32 %v1136_v37, %v1135_v63  ;;  %v1249_v10 = vadd.f32 %v1248_v6, %v1247_v47  ;;  %v1361_v35 = vadd.f32 %v1360_v54, %v1359_v8  ;;  %v5023_v19 = vld [vmem:[%s4335_s25 + $0x1b8] sm:$0xff] }
 0x188   : > { %v802_v5 = vrot.slane %v801_v24, 1  ;;  %v914_v42 = vrot.slane %v913_v25, 1  ;;  %v1026_v13 = vrot.slane %v1025_v27, 1  ;;  %v1473_v58 = vadd.f32 %v1472_v53, %v1471_v38  ;;  %v5026_v49 = vld [vmem:[%s4335_s25 + $0x1f8] sm:$0xff] }
 0x189   : > { %v691_v52 = vadd.f32 %v690_v1, %v689_v50  ;;  %v1138_v46 = vrot.slane %v1137_v2, 1  ;;  %v1250_v57 = vrot.slane %v1249_v10, 1  ;;  %v1362_v41 = vrot.slane %v1361_v35, 1  ;;  %v5029_v14 = vld [vmem:[%s4335_s25 + $0x238] sm:$0xff] }
 0x18a   : > { %v803_v59 = vadd.f32 %v802_v5, %v801_v24  ;;  %v915_v22 = vadd.f32 %v914_v42, %v913_v25  ;;  %v1027_v55 = vadd.f32 %v1026_v13, %v1025_v27  ;;  %v1474_v31 = vrot.slane %v1473_v58, 1  ;;  %v5034_v12 = vld [vmem:[%s4335_s25 + $0x278] sm:$0xff] }
 0x18b   : > { %v1139_v45 = vadd.f32 %v1138_v46, %v1137_v2  ;;  %v1251_v34 = vadd.f32 %v1250_v57, %v1249_v10  ;;  %v1363_v26 = vadd.f32 %v1362_v41, %v1361_v35  ;;  %v1503_v28 = vpack.c.bf16 %v691_v52, %v691_v52  ;;  %v5037_v0 = vld [vmem:[%s4335_s25 + $0x2b8] sm:$0xff] }
 0x18c   : > { %v1475_v48 = vadd.f32 %v1474_v31, %v1473_v58  ;;  %v1519_v4 = vpack.c.bf16 %v803_v59, %v803_v59  ;;  %v1535_v23 = vpack.c.bf16 %v915_v22, %v915_v22  ;;  %v1551_v61 = vpack.c.bf16 %v1027_v55, %v1027_v55  ;;  %v5040_v63 = vld [vmem:[%s4335_s25 + $0x2f8] sm:$0xff] }
 0x18d   : > { %v1567_v29 = vpack.c.bf16 %v1139_v45, %v1139_v45  ;;  %v1583_v56 = vpack.c.bf16 %v1251_v34, %v1251_v34  ;;  %v1599_v7 = vpack.c.bf16 %v1363_v26, %v1363_v26  ;;  %v2019_v11 = vunpack.c.l.b16 %v1503_v28  ;;  %v5046_v32 = vld [vmem:[%s4335_s25 + $0x338] sm:$0xff] }
 0x18e   : > { %v1615_v17 = vpack.c.bf16 %v1475_v48, %v1475_v48  ;;  %v2035_v62 = vunpack.c.l.b16 %v1519_v4  ;;  %v2051_v3 = vunpack.c.l.b16 %v1535_v23  ;;  %v2067_v9 = vunpack.c.l.b16 %v1551_v61  ;;  %v5049_v15 = vld [vmem:[%s4335_s25 + $0x378] sm:$0xff] }
 0x18f   : > { %v2083_v39 = vunpack.c.l.b16 %v1567_v29  ;;  %v2099_v44 = vunpack.c.l.b16 %v1583_v56  ;;  %v2115_v43 = vunpack.c.l.b16 %v1599_v7  ;;  %v352_v30 = vunpack.c.l.bf16 %v5005_v21  ;;  %v5052_v38 = vld [vmem:[%s4335_s25 + $0x3b8] sm:$0xff] }
 0x190   : > { %v2131_v33 = vunpack.c.l.b16 %v1615_v17  ;;  %v2232_v20 = vsel %vm2134_vm0, %v2035_v62, %v2019_v11  ;;  %v368_v47 = vunpack.c.l.bf16 %v5008_v18  ;;  %v384_v8 = vunpack.c.l.bf16 %v5011_v36  ;;  %v5059_v24 = vld [vmem:[%s4335_s25 + $0x3f8] sm:$0xff] }
 0x191   : > { %v2233_v60 = vsel %vm2136_vm1, %v2051_v3, %v2232_v20  ;;  %v400_v50 = vunpack.c.l.bf16 %v5014_v40  ;;  %v416_v37 = vunpack.c.l.bf16 %v5017_v51  ;;  %v432_v6 = vunpack.c.l.bf16 %v5020_v16 }
 0x192   : > { %v2234_v54 = vsel %vm2138_vm2, %v2067_v9, %v2233_v60  ;;  %v448_v25 = vunpack.c.l.bf16 %v5023_v19  ;;  %v464_v27 = vunpack.c.l.bf16 %v5026_v49  ;;  %v480_v53 = vunpack.c.l.bf16 %v5029_v14 }
 0x193   : > { %v2235_v1 = vsel %vm2140_vm3, %v2083_v39, %v2234_v54  ;;  %v496_v2 = vunpack.c.l.bf16 %v5034_v12  ;;  %v512_v10 = vunpack.c.l.bf16 %v5037_v0  ;;  %v528_v35 = vunpack.c.l.bf16 %v5040_v63 }
 0x194   : > { %v2236_v5 = vsel %vm2142_vm4, %v2099_v44, %v2235_v1  ;;  %v544_v42 = vunpack.c.l.bf16 %v5046_v32  ;;  %v560_v13 = vunpack.c.l.bf16 %v5049_v15  ;;  %v576_v58 = vunpack.c.l.bf16 %v5052_v38 }
 0x195   : > { %v2237_v52 = vsel %vm2144_vm5, %v2115_v43, %v2236_v5  ;;  %v592_v46 = vunpack.c.l.bf16 %v5059_v24  ;;  %v692_v57 = vadd.f32 %v368_v47, %v352_v30  ;;  %v804_v41 = vadd.f32 %v400_v50, %v384_v8 }
 0x196   : > { %v2238_v59 = vsel %vm2146_vm6, %v2131_v33, %v2237_v52  ;;  %v916_v22 = vadd.f32 %v432_v6, %v416_v37  ;;  %v1028_v55 = vadd.f32 %v464_v27, %v448_v25  ;;  %v1140_v31 = vadd.f32 %v496_v2, %v480_v53 }
 0x197   : > { %v2266_v45 = vpack.c.b16 %v2238_v59, %v2238_v59  ;;  %v693_v34 = vrot.slane %v692_v57, 4  ;;  %v805_v26 = vrot.slane %v804_v41, 4  ;;  %v1252_v28 = vadd.f32 %v528_v35, %v512_v10 }
 0x198   : > { %v917_v48 = vrot.slane %v916_v22, 4  ;;  %v1029_v4 = vrot.slane %v1028_v55, 4  ;;  %v1141_v23 = vrot.slane %v1140_v31, 4  ;;  %v1364_v61 = vadd.f32 %v560_v13, %v544_v42 }
 0x199   : > { %3230 = vmatmul.bf16.vlgmr.msrb.gmra.mxu1 %v2266_v45  ;;  %v694_v29 = vadd.f32 %v693_v34, %v692_v57  ;;  %v806_v56 = vadd.f32 %v805_v26, %v804_v41  ;;  %v1253_v7 = vrot.slane %v1252_v28, 4  ;;  %v1476_v11 = vadd.f32 %v592_v46, %v576_v58 }
 0x19a   : > { %v918_v17 = vadd.f32 %v917_v48, %v916_v22  ;;  %v1030_v62 = vadd.f32 %v1029_v4, %v1028_v55  ;;  %v1142_v3 = vadd.f32 %v1141_v23, %v1140_v31  ;;  %v1365_v9 = vrot.slane %v1364_v61, 4 }
 0x19b   : > { %v695_v39 = vrot.slane %v694_v29, 2  ;;  %v807_v44 = vrot.slane %v806_v56, 2  ;;  %v1254_v43 = vadd.f32 %v1253_v7, %v1252_v28  ;;  %v1477_v30 = vrot.slane %v1476_v11, 4 }
 0x19c   : > { %v919_v33 = vrot.slane %v918_v17, 2  ;;  %v1031_v20 = vrot.slane %v1030_v62, 2  ;;  %v1143_v47 = vrot.slane %v1142_v3, 2  ;;  %v1366_v8 = vadd.f32 %v1365_v9, %v1364_v61 }
 0x19d   : > { %v696_v60 = vadd.f32 %v695_v39, %v694_v29  ;;  %v808_v50 = vadd.f32 %v807_v44, %v806_v56  ;;  %v1255_v37 = vrot.slane %v1254_v43, 2  ;;  %v1478_v6 = vadd.f32 %v1477_v30, %v1476_v11 }
 0x19e   : > { %v920_v54 = vadd.f32 %v919_v33, %v918_v17  ;;  %v1032_v25 = vadd.f32 %v1031_v20, %v1030_v62  ;;  %v1144_v27 = vadd.f32 %v1143_v47, %v1142_v3  ;;  %v1367_v53 = vrot.slane %v1366_v8, 2 }
 0x19f   : > { %v697_v1 = vrot.slane %v696_v60, 1  ;;  %v809_v2 = vrot.slane %v808_v50, 1  ;;  %v1256_v10 = vadd.f32 %v1255_v37, %v1254_v43  ;;  %v1479_v35 = vrot.slane %v1478_v6, 2 }
 0x1a0   : > { %v921_v5 = vrot.slane %v920_v54, 1  ;;  %v1033_v42 = vrot.slane %v1032_v25, 1  ;;  %v1145_v13 = vrot.slane %v1144_v27, 1  ;;  %v1368_v58 = vadd.f32 %v1367_v53, %v1366_v8 }
 0x1a1   : > { %v698_v52 = vadd.f32 %v697_v1, %v696_v60  ;;  %v810_v46 = vadd.f32 %v809_v2, %v808_v50  ;;  %v1257_v57 = vrot.slane %v1256_v10, 1  ;;  %v1480_v41 = vadd.f32 %v1479_v35, %v1478_v6  ;;  %v5093_v1 = vpop.f32.mrf.mxu3 }
 0x1a2   : > { %v922_v59 = vadd.f32 %v921_v5, %v920_v54  ;;  %v1034_v22 = vadd.f32 %v1033_v42, %v1032_v25  ;;  %v1146_v55 = vadd.f32 %v1145_v13, %v1144_v27  ;;  %v1369_v31 = vrot.slane %v1368_v58, 1  ;;  %v5083_v54 = vpop.f32.mrf.mxu0  ;;  %v5085_v25 = vpop.f32.mrf.mxu1 }
 0x1a3   : > { %v1258_v45 = vadd.f32 %v1257_v57, %v1256_v10  ;;  %v1481_v34 = vrot.slane %v1480_v41, 1  ;;  %v1504_v26 = vpack.c.bf16 %v698_v52, %v698_v52  ;;  %v1520_v28 = vpack.c.bf16 %v810_v46, %v810_v46 }
 0x1a4   : > { %v1370_v48 = vadd.f32 %v1369_v31, %v1368_v58  ;;  %v1536_v4 = vpack.c.bf16 %v922_v59, %v922_v59  ;;  %v1552_v23 = vpack.c.bf16 %v1034_v22, %v1034_v22  ;;  %v1568_v61 = vpack.c.bf16 %v1146_v55, %v1146_v55 }
 0x1a5   : > { %v1482_v29 = vadd.f32 %v1481_v34, %v1480_v41  ;;  %v1584_v56 = vpack.c.bf16 %v1258_v45, %v1258_v45  ;;  %v2020_v7 = vunpack.c.l.b16 %v1504_v26  ;;  %v2036_v11 = vunpack.c.l.b16 %v1520_v28 }
 0x1a6   : > { %v1600_v17 = vpack.c.bf16 %v1370_v48, %v1370_v48  ;;  %v2052_v62 = vunpack.c.l.b16 %v1536_v4  ;;  %v2068_v3 = vunpack.c.l.b16 %v1552_v23  ;;  %v2084_v9 = vunpack.c.l.b16 %v1568_v61 }
 0x1a7   : > { %v1616_v39 = vpack.c.bf16 %v1482_v29, %v1482_v29  ;;  %v2100_v44 = vunpack.c.l.b16 %v1584_v56  ;;  %v2239_v43 = vsel %vm2134_vm0, %v2036_v11, %v2020_v7  ;;  %v353_v30 = vunpack.c.h.bf16 %v5005_v21 }
 0x1a8   : > { %v2116_v33 = vunpack.c.l.b16 %v1600_v17  ;;  %v2240_v20 = vsel %vm2136_vm1, %v2052_v62, %v2239_v43  ;;  %v369_v47 = vunpack.c.h.bf16 %v5008_v18  ;;  %v385_v8 = vunpack.c.h.bf16 %v5011_v36  ;;  %v5091_v36 = vpop.f32.mrf.mxu2 }
 0x1a9   : > { %v2132_v60 = vunpack.c.l.b16 %v1616_v39  ;;  %v2241_v50 = vsel %vm2138_vm2, %v2068_v3, %v2240_v20  ;;  %v401_v37 = vunpack.c.h.bf16 %v5014_v40  ;;  %v417_v6 = vunpack.c.h.bf16 %v5017_v51  ;;  %v3103_v61 = vpop.f32.mrf.mxu3 }
 0x1aa   : > { %v2242_v21 = vsel %vm2140_vm3, %v2084_v9, %v2241_v50  ;;  %v433_v27 = vunpack.c.h.bf16 %v5020_v16  ;;  %v449_v53 = vunpack.c.h.bf16 %v5023_v19  ;;  %v465_v18 = vunpack.c.h.bf16 %v5026_v49  ;;  %v3064_v34 = vpop.f32.mrf.mxu0 }
 0x1ab   : > { %v2243_v40 = vsel %vm2142_vm4, %v2100_v44, %v2242_v21  ;;  %v481_v51 = vunpack.c.h.bf16 %v5029_v14  ;;  %v497_v2 = vunpack.c.h.bf16 %v5034_v12  ;;  %v513_v10 = vunpack.c.h.bf16 %v5037_v0 }
 0x1ac   : > { %v2244_v35 = vsel %vm2144_vm5, %v2116_v33, %v2243_v40  ;;  %v529_v16 = vunpack.c.h.bf16 %v5040_v63  ;;  %v545_v19 = vunpack.c.h.bf16 %v5046_v32  ;;  %v561_v49 = vunpack.c.h.bf16 %v5049_v15 }
 0x1ad   : > { %v2245_v5 = vsel %vm2146_vm6, %v2132_v60, %v2244_v35  ;;  %v577_v42 = vunpack.c.h.bf16 %v5052_v38  ;;  %v593_v13 = vunpack.c.h.bf16 %v5059_v24  ;;  %v699_v58 = vadd.f32 %v369_v47, %v353_v30  ;;  %v3077_v24 = vpop.f32.mrf.mxu1 }
 0x1ae   : > { %v2267_v14 = vpack.c.b16 %v2245_v5, %v2245_v5  ;;  %v811_v52 = vadd.f32 %v401_v37, %v385_v8  ;;  %v923_v12 = vadd.f32 %v433_v27, %v417_v6  ;;  %v1035_v46 = vadd.f32 %v465_v18, %v449_v53 }
 0x1af   : > { %v700_v0 = vrot.slane %v699_v58, 4  ;;  %v1147_v57 = vadd.f32 %v497_v2, %v481_v51  ;;  %v1259_v41 = vadd.f32 %v529_v16, %v513_v10  ;;  %v1371_v59 = vadd.f32 %v561_v49, %v545_v19 }
 0x1b0   : > { %3243 = vmatmul.bf16.vlgmr.msrb.gmra.mxu2 %v2267_v14  ;;  %v812_v63 = vrot.slane %v811_v52, 4  ;;  %v924_v32 = vrot.slane %v923_v12, 4  ;;  %v1036_v22 = vrot.slane %v1035_v46, 4  ;;  %v1483_v15 = vadd.f32 %v593_v13, %v577_v42  ;;  %v3090_v23 = vpop.f32.mrf.mxu2 }
 0x1b1   : > { %v701_v55 = vadd.f32 %v700_v0, %v699_v58  ;;  %v1148_v31 = vrot.slane %v1147_v57, 4  ;;  %v1260_v45 = vrot.slane %v1259_v41, 4  ;;  %v1372_v38 = vrot.slane %v1371_v59, 4  ;;  %v3153_v58 = vpop.f32.mrf.mxu3  ;;  %v4076_v0 = vld [vmem:[%s5156_s2] ss:$0 sm:$0xff] }
 0x1b2   : > { %v813_v26 = vadd.f32 %v812_v63, %v811_v52  ;;  %v925_v28 = vadd.f32 %v924_v32, %v923_v12  ;;  %v1037_v48 = vadd.f32 %v1036_v22, %v1035_v46  ;;  %v1484_v4 = vrot.slane %v1483_v15, 4  ;;  %v3114_v35 = vpop.f32.mrf.mxu0 }
 0x1b3   : > { %v702_v29 = vrot.slane %v701_v55, 2  ;;  %v1149_v56 = vadd.f32 %v1148_v31, %v1147_v57  ;;  %v1261_v7 = vadd.f32 %v1260_v45, %v1259_v41  ;;  %v1373_v11 = vadd.f32 %v1372_v38, %v1371_v59 }
 0x1b4   : > { %v814_v17 = vrot.slane %v813_v26, 2  ;;  %v926_v62 = vrot.slane %v925_v28, 2  ;;  %v1038_v3 = vrot.slane %v1037_v48, 2  ;;  %v1485_v9 = vadd.f32 %v1484_v4, %v1483_v15 }
 0x1b5   : > { %v703_v39 = vadd.f32 %v702_v29, %v701_v55  ;;  %v1150_v44 = vrot.slane %v1149_v56, 2  ;;  %v1262_v43 = vrot.slane %v1261_v7, 2  ;;  %v1374_v30 = vrot.slane %v1373_v11, 2  ;;  %v3127_v16 = vpop.f32.mrf.mxu1 }
 0x1b6   : > { %v815_v33 = vadd.f32 %v814_v17, %v813_v26  ;;  %v927_v20 = vadd.f32 %v926_v62, %v925_v28  ;;  %v1039_v47 = vadd.f32 %v1038_v3, %v1037_v48  ;;  %v1486_v8 = vrot.slane %v1485_v9, 2 }
 0x1b7   : > { %v704_v60 = vrot.slane %v703_v39, 1  ;;  %v1151_v50 = vadd.f32 %v1150_v44, %v1149_v56  ;;  %v1263_v37 = vadd.f32 %v1262_v43, %v1261_v7  ;;  %v1375_v6 = vadd.f32 %v1374_v30, %v1373_v11 }
 0x1b8   : > { %v816_v21 = vrot.slane %v815_v33, 1  ;;  %v928_v27 = vrot.slane %v927_v20, 1  ;;  %v1040_v53 = vrot.slane %v1039_v47, 1  ;;  %v1487_v18 = vadd.f32 %v1486_v8, %v1485_v9  ;;  %v3140_v13 = vpop.f32.mrf.mxu2 }
 0x1b9   : > { %v705_v40 = vadd.f32 %v704_v60, %v703_v39  ;;  %v1152_v51 = vrot.slane %v1151_v50, 1  ;;  %v1264_v2 = vrot.slane %v1263_v37, 1  ;;  %v1376_v10 = vrot.slane %v1375_v6, 1  ;;  %v3155_v62 = vpop.f32.mrf.mxu3 }
 0x1ba   : > { %v817_v19 = vadd.f32 %v816_v21, %v815_v33  ;;  %v929_v49 = vadd.f32 %v928_v27, %v927_v20  ;;  %v1041_v5 = vadd.f32 %v1040_v53, %v1039_v47  ;;  %v1488_v42 = vrot.slane %v1487_v18, 1  ;;  %v3116_v29 = vpop.f32.mrf.mxu0 }
 0x1bb   : > { %v1153_v14 = vadd.f32 %v1152_v51, %v1151_v50  ;;  %v1265_v52 = vadd.f32 %v1264_v2, %v1263_v37  ;;  %v1377_v12 = vadd.f32 %v1376_v10, %v1375_v6  ;;  %v1505_v46 = vpack.c.bf16 %v705_v40, %v705_v40 }
 0x1bc   : > { %v1489_v57 = vadd.f32 %v1488_v42, %v1487_v18  ;;  %v1521_v41 = vpack.c.bf16 %v817_v19, %v817_v19  ;;  %v1537_v59 = vpack.c.bf16 %v929_v49, %v929_v49  ;;  %v1553_v63 = vpack.c.bf16 %v1041_v5, %v1041_v5 }
 0x1bd   : > { %v1569_v32 = vpack.c.bf16 %v1153_v14, %v1153_v14  ;;  %v1585_v22 = vpack.c.bf16 %v1265_v52, %v1265_v52  ;;  %v1601_v15 = vpack.c.bf16 %v1377_v12, %v1377_v12  ;;  %v2021_v55 = vunpack.c.l.b16 %v1505_v46  ;;  %v3129_v56 = vpop.f32.mrf.mxu1 }
 0x1be   : > { %v1617_v31 = vpack.c.bf16 %v1489_v57, %v1489_v57  ;;  %v2037_v45 = vunpack.c.l.b16 %v1521_v41  ;;  %v2053_v38 = vunpack.c.l.b16 %v1537_v59  ;;  %v2069_v34 = vunpack.c.l.b16 %v1553_v63 }
 0x1bf   : > { %v2085_v24 = vunpack.c.l.b16 %v1569_v32  ;;  %v3063_v26 = vadd.f32 %v4076_v0, %v5083_v54  ;;  %v2101_v28 = vunpack.c.l.b16 %v1585_v22  ;;  %v2117_v4 = vunpack.c.l.b16 %v1601_v15 }
 0x1c0   : > { %v2246_v48 = vsel %vm2134_vm0, %v2037_v45, %v2021_v55  ;;  %v2133_v7 = vunpack.c.l.b16 %v1617_v31  ;;  %v3142_v17 = vpop.f32.mrf.mxu2 }
 0x1c1   : > { %v2247_v23 = vsel %vm2136_vm1, %v2053_v38, %v2246_v48  ;;  %v3076_v61 = vadd.f32 %v5085_v25, %v3063_v26 }
 0x1c2   : > { %v2248_v11 = vsel %vm2138_vm2, %v2069_v34, %v2247_v23  ;;  %v3166_v20 = vpop.f32.mrf.mxu0 }
 0x1c3   : > { %v2249_v3 = vsel %vm2140_vm3, %v2085_v24, %v2248_v11  ;;  %v3089_v9 = vadd.f32 %v5091_v36, %v3076_v61 }
 0x1c4   : > { %v2250_v54 = vsel %vm2142_vm4, %v2101_v28, %v2249_v3 }
 0x1c5   : > { %v2251_v39 = vsel %vm2144_vm5, %v2117_v4, %v2250_v54  ;;  %v3102_v44 = vadd.f32 %v5093_v1, %v3089_v9 }
 0x1c6   : > { %v2252_v43 = vsel %vm2146_vm6, %v2133_v7, %v2251_v39 }
 0x1c7   : > { %v2268_v25 = vpack.c.b16 %v2252_v43, %v2252_v43  ;;  %v3115_v30 = vadd.f32 %v3114_v35, %v3102_v44 }
 0x1c8   : > { %v3192_v47 = vpop.f32.mrf.mxu2 }
 0x1c9   : > { %3256 = vmatmul.bf16.vlgmr.msrb.gmra.mxu3 %v2268_v25  ;;  %v3128_v33 = vadd.f32 %v3127_v16, %v3115_v30 }
 0x1ca   : > { %v3168_v6 = vpop.f32.mrf.mxu0 }
 0x1cb   : > { %v3141_v8 = vadd.f32 %v3140_v13, %v3128_v33 }
 0x1cd   : > { %v3154_v60 = vadd.f32 %v3153_v58, %v3141_v8  ;;  %v3179_v50 = vpop.f32.mrf.mxu1 }
 0x1cf   : > { %v3167_v37 = vadd.f32 %v3166_v20, %v3154_v60 }
 0x1d0   : > { %v3194_v21 = vpop.f32.mrf.mxu2 }
 0x1d1   : > { %v3180_v36 = vadd.f32 %v3179_v50, %v3167_v37 }
 0x1d3   : > { %v3193_v27 = vadd.f32 %v3192_v47, %v3180_v36 }
 0x1d5   : > { %v3181_v53 = vpop.f32.mrf.mxu1 }
 0x1ec   : > { %v3205_v1 = vpop.f32.mrf.mxu3 }
 0x1ed   : > { %v3206_v18 = vadd.f32 %v3205_v1, %v3193_v27 }
 0x1f4   : > { %v3207_v40 = vpop.f32.mrf.mxu3 }
 0x1fd   : > { %v3218_v51 = vpop.f32.mrf.mxu0 }
 0x1fe   : > { %v3219_v2 = vadd.f32 %v3218_v51, %v3206_v18 }
 0x205   : > { %v3220_v10 = vpop.f32.mrf.mxu0 }
 0x216   : > { %v3231_v35 = vpop.f32.mrf.mxu1 }
 0x217   : > { %v3232_v5 = vadd.f32 %v3231_v35, %v3219_v2 }
 0x21e   : > { %v3233_v16 = vpop.f32.mrf.mxu1 }
 0x233   : > { %v3244_v19 = vpop.f32.mrf.mxu2 }
 0x234   : > { %v3245_v42 = vadd.f32 %v3244_v19, %v3232_v5 }
 0x23b   : > { %v3246_v49 = vpop.f32.mrf.mxu2 }
 0x24c   : > { %v3257_v13 = vpop.f32.mrf.mxu3 }
 0x24d   : > { %v3258_v58 = vadd.f32 %v3257_v13, %v3245_v42 }
 0x24f   : > { %3261 = vst [vmem:[%s208_s28] sm:$0xff] %v3258_v58 }
 0x250   : > { %4164 = shalt.err (!%p4161_p10)
}
 0x251   : > { %4022 = dma.vmem_to_hbm [thread:$0]  (%p4302_p7), %s3276_s29, 128, %s3278_s30, %s3263_s7  }
 0x254   : > { %v3259_v14 = vpop.f32.mrf.mxu3 }
 0x255 PF: > { %s3289_s10 = sand.u32 1, %s4195_s12   ;;  %p5205_p12 = scmp.ge.s32.totalorder %s4207_s15, 2 }
 0x256   : > { %s3290_s18 = scalar_lea.sflag [#allocation4], %s3289_s10 }
 0x257   : > { %p4033_p13 = pnand %p5205_p12, %p4268_p6 }
 0x259   : > { %p4034_p0 = pneg %p4033_p13 }
 0x25b   : > { %4190 = dma.done.wait (%p4034_p0), %s3290_s18, 128  }
 0x25c   : > { %4192 = vsyncadd (%p4034_p0), %s3290_s18, 4294967168  ;;  %p17_p3 = scmp.ge.s32.totalorder %s4286_s26, 4   ;;  %s5206_s12 = smov %s4199_s13 }
 0x25d   : > { %s5207_s13 = smov %s4203_s14  ;;  %s5208_s14 = smov %s4298_s4 }
 0x25e   : > { %s5209_s15 = smov %s4286_s26  ;;  %19 = sbr.rel (!%p17_p3) target bundleno = 6 (0x6), region = 81 }
 0x263   :  { %3296 = vsyncpa [#allocation3], 1 }
 0x264   :  { %3298 = vsyncpa [#allocation3 + $0x1], 1 }
 0x265   :  { %3299 = vsyncpa [#allocation6], 1 }
 0x266   :  { %3300 = vsyncpa [#allocation4], 1 }
 0x267   :  { %3302 = vsyncpa [#allocation4 + $0x1], 1 }

</bundles_post_ra>
